<compile_context>
chip_gen: v7x
topology: tpu7x:2x2x1
jax: 0.10.0
libtpu: 0.0.40
codegen_flags: <defaults>
</compile_context>

<pallas_src>
import functools
import math

import jax
import jax.numpy as jnp
from jax.experimental import pallas as pl
from jax.experimental.pallas import tpu as pltpu

_SUBLANE = 8
_LANE = 128


# ---------------------------------------------------------------------------
# Hardware-generation-aware parameters.
# ---------------------------------------------------------------------------
def _hw_params():
    try:
        kind = jax.devices()[0].device_kind.lower()
    except Exception:  # pragma: no cover - defensive, e.g. no devices yet
        kind = ""
    is_v7 = ("v7" in kind) or ("tpu7" in kind)
    # Dual-TensorCore grid split only pays off on v7x; on single-TC v5e/v6e it
    # just adds a wasted clamped tile re-read.
    num_cores = 2 if is_v7 else 1
    # v7x has 64 MiB VMEM/TC; v5e/v6e have 128 MiB.
    vmem_limit = (48 if is_v7 else 64) * 1024 * 1024
    tile_bytes = 8 * 1024 * 1024
    return num_cores, vmem_limit, tile_bytes


# ---------------------------------------------------------------------------
# Streaming pass 1: per-(sublane, lane) partial sums and sums-of-squares.
# Accumulators are (8, LC) output blocks resident in VMEM across the reduction
# ('arbitrary') axis; each core (leading 'parallel' axis) owns its own block.
# ---------------------------------------------------------------------------
def _stats_kernel(x_ref, sum_ref, sq_ref, *, row_tile, tiles_per_core,
                  n_rows, n_tiles, ragged, oob_possible, unroll):
    c = pl.program_id(0)
    i = pl.program_id(1)
    tile_idx = c * tiles_per_core + i

    @pl.when(i == 0)
    def _init():
        sum_ref[...] = jnp.zeros_like(sum_ref)
        sq_ref[...] = jnp.zeros_like(sq_ref)

    lanes = sum_ref.shape[-1]

    def accumulate(masked):
        if row_tile % _SUBLANE == 0:
            n_sub = row_tile // _SUBLANE

            def body(g, carry):
                s_acc, q_acc = carry
                off = pl.multiple_of(g * _SUBLANE, _SUBLANE)
                blk = x_ref[pl.ds(off, _SUBLANE), :].astype(jnp.float32)
                if masked:
                    row_idx = (tile_idx * row_tile + off
                               + jax.lax.broadcasted_iota(
                                   jnp.int32, (_SUBLANE, 1), 0))
                    blk = jnp.where(row_idx < n_rows, blk, 0.0)
                return s_acc + blk, q_acc + blk * blk

            z = jnp.zeros((_SUBLANE, lanes), jnp.float32)
            s_acc, q_acc = jax.lax.fori_loop(0, n_sub, body, (z, z),
                                             unroll=unroll)
            sum_ref[...] += s_acc
            sq_ref[...] += q_acc
        else:
            # Tiny non-8-aligned tile (only when row_tile == full folded
            # extent): one reduce, deposited into sublane 0.
            x = x_ref[...].astype(jnp.float32)
            if masked:
                row_idx = (tile_idx * row_tile
                           + jax.lax.broadcasted_iota(
                               jnp.int32, (row_tile, 1), 0))
                x = jnp.where(row_idx < n_rows, x, 0.0)
            s1 = jnp.sum(x, axis=0, keepdims=True)
            q1 = jnp.sum(x * x, axis=0, keepdims=True)
            row0 = jax.lax.broadcasted_iota(jnp.int32, (_SUBLANE, 1), 0) == 0
            sum_ref[...] += jnp.where(row0, s1, 0.0)
            sq_ref[...] += jnp.where(row0, q1, 0.0)

    if ragged:
        # Masking cost is confined to the single ragged last tile; clamped
        # out-of-range tiles (dual-core only) are skipped entirely.
        @pl.when(tile_idx < n_tiles - 1)
        def _full_tiles():
            accumulate(False)

        @pl.when(tile_idx == n_tiles - 1)
        def _ragged_tile():
            accumulate(True)
    elif oob_possible:
        @pl.when(tile_idx < n_tiles)
        def _real_tiles():
            accumulate(False)
    else:
        accumulate(False)


# ---------------------------------------------------------------------------
# Streaming pass 2: single FMA.  Points pass through via scale=1 / shift=0.
# ---------------------------------------------------------------------------
def _norm_kernel(scale_ref, shift_ref, x_ref, o_ref):
    x = x_ref[...].astype(jnp.float32)
    o_ref[...] = (x * scale_ref[...] + shift_ref[...]).astype(o_ref.dtype)


# ---------------------------------------------------------------------------
# Single-pass VMEM-resident kernel for small / medium inputs:
# one HBM read + one HBM write; stats, scale/shift and normalization fused.
# ---------------------------------------------------------------------------
def _resident_kernel(x_ref, gl_ref, bl_ref, fm_ref, chmask_ref, o_ref, *,
                     C, n_rows, eps):
    x = x_ref[...].astype(jnp.float32)              # (R, LC)
    s = jnp.sum(x, axis=0, keepdims=True)           # (1, LC) per-lane sums
    q = jnp.sum(x * x, axis=0, keepdims=True)       # (1, LC)

    # Fold the K lane-replicas of each channel into per-lane channel totals
    # with C masked lane-reductions (C is small); avoids cross-lane reshapes.
    tot_s = jnp.zeros_like(s)
    tot_q = jnp.zeros_like(q)
    for c in range(C):                               # static loop, C is small
        m = chmask_ref[pl.ds(c, 1), :]               # (1, LC) 0/1 mask
        cs = jnp.sum(m * s, axis=1, keepdims=True)   # (1, 1)
        cq = jnp.sum(m * q, axis=1, keepdims=True)
        tot_s = tot_s + cs * m
        tot_q = tot_q + cq * m

    inv_n = jnp.float32(1.0 / n_rows)
    mean = tot_s * inv_n
    var = jnp.maximum(tot_q * inv_n - mean * mean, 0.0)   # biased, clamped
    inv_std = jax.lax.rsqrt(var + jnp.float32(eps))

    fm = fm_ref[...]                                 # 1.0 on feature lanes
    scale = jnp.where(fm > 0, gl_ref[...] * inv_std, 1.0)
    offset = jnp.where(fm > 0, bl_ref[...] - mean * scale, 0.0)
    o_ref[...] = (x * scale + offset).astype(o_ref.dtype)


def _resident_fits(R, LC, itemsize, vmem_limit):
    pad = (-(-R // _SUBLANE) * _SUBLANE) * (-(-LC // _LANE) * _LANE)
    # in + out buffers plus slack for f32 staging / temporaries.
    need = pad * (2 * itemsize + 2 * 4)
    return need <= int(vmem_limit * 0.7)


def _resident_path(x2d, gamma, beta, *, C, K, rows, eps, vmem_limit):
    R, LC = x2d.shape
    lane_ch = jnp.tile(jnp.arange(C, dtype=jnp.int32), K)           # (LC,)
    gl = jnp.tile(jnp.concatenate([jnp.ones((3,), jnp.float32),
                                   gamma.astype(jnp.float32)]), K)
    bl = jnp.tile(jnp.concatenate([jnp.zeros((3,), jnp.float32),
                                   beta.astype(jnp.float32)]), K)
    fm = (lane_ch >= 3).astype(jnp.float32)
    chmask = (lane_ch[None, :] ==
              jnp.arange(C, dtype=jnp.int32)[:, None]).astype(jnp.float32)
    kernel = functools.partial(_resident_kernel, C=C, n_rows=rows, eps=eps)
    return pl.pallas_call(
        kernel,
        out_shape=jax.ShapeDtypeStruct((R, LC), x2d.dtype),
        compiler_params=pltpu.CompilerParams(vmem_limit_bytes=vmem_limit),
    )(x2d, gl.reshape(1, LC), bl.reshape(1, LC), fm.reshape(1, LC), chmask)


# ---------------------------------------------------------------------------
# Public entry point.
# ---------------------------------------------------------------------------
def field_batch_norm(in_feature, gamma, beta, *, eps=1e-5, row_tile=None,
                     num_cores=None, use_resident=None):
    """Pallas implementation of FieldBatchNormalization.forward (training mode).

    in_feature: (B, N, 3 + Fin)
    gamma/beta: (Fin,)  BatchNorm1d affine parameters.
    returns:    (B, N, 3 + Fin) -- points unchanged, features batch-normalized.
    """
    B, N, C = in_feature.shape
    Fin = C - 3
    assert Fin >= 1 and gamma.shape == (Fin,) and beta.shape == (Fin,)

    rows = B * N
    itemsize = jnp.dtype(in_feature.dtype).itemsize

    # Fold rows into lanes: (rows, C) -> (R, K*C); contiguous => free reshape.
    k_target = _LANE // math.gcd(C, _LANE)
    K = math.gcd(rows, k_target)
    R = rows // K
    LC = K * C
    x2d = in_feature.reshape(R, LC)

    ncores, vmem_limit, tile_bytes = _hw_params()
    if num_cores is not None:
        ncores = int(num_cores)

    # ---- single-pass VMEM-resident path (skips the second HBM read) --------
    logical_bytes = rows * C * itemsize
    if use_resident is None:
        lane_dense = (LC % _LANE == 0)
        want_res = (row_tile is None) and (
            logical_bytes <= (1 << 20)
            or (lane_dense and logical_bytes <= (8 << 20)))
    else:
        want_res = bool(use_resident)
    if want_res and _resident_fits(R, LC, itemsize, vmem_limit):
        out2d = _resident_path(x2d, gamma, beta, C=C, K=K, rows=rows, eps=eps,
                               vmem_limit=vmem_limit)
        return out2d.reshape(B, N, C)

    # ---- streaming two-pass path --------------------------------------------
    # Row tile in folded rows: ~8 MiB per block, dtype-aware sublane alignment,
    # or the full folded extent if smaller.
    row_align = max(_SUBLANE, 32 // max(1, itemsize))
    if row_tile is None:
        row_tile = max(row_align,
                       (tile_bytes // (LC * itemsize)) // row_align * row_align)
    if row_tile >= R:
        row_tile = R
    else:
        row_tile = max(row_align, (row_tile // row_align) * row_align)

    n_tiles = pl.cdiv(R, row_tile)
    tiles_per_core = pl.cdiv(n_tiles, ncores)
    ragged = (R % row_tile) != 0
    oob_possible = (tiles_per_core * ncores) != n_tiles

    n_sub = max(1, row_tile // _SUBLANE)
    vregs_per_blk = max(1, pl.cdiv(LC, _LANE))
    unroll = max(1, min(8, 48 // vregs_per_blk - 2, n_sub))

    def x_stats_map(c, i):
        # Clamp so a fully-out-of-range logical tile re-reads the last real
        # tile (its accumulation is skipped in-kernel) instead of an OOB DMA.
        return (jnp.minimum(c * tiles_per_core + i, n_tiles - 1), 0)

    acc_shape = (ncores * _SUBLANE, LC)
    stats_kernel = functools.partial(
        _stats_kernel, row_tile=row_tile, tiles_per_core=tiles_per_core,
        n_rows=R, n_tiles=n_tiles, ragged=ragged, oob_possible=oob_possible,
        unroll=unroll)

    sums, sqs = pl.pallas_call(
        stats_kernel,
        out_shape=(jax.ShapeDtypeStruct(acc_shape, jnp.float32),
                   jax.ShapeDtypeStruct(acc_shape, jnp.float32)),
        grid_spec=pltpu.PrefetchScalarGridSpec(
            num_scalar_prefetch=0,
            grid=(ncores, tiles_per_core),
            in_specs=[pl.BlockSpec((row_tile, LC), x_stats_map)],
            out_specs=[pl.BlockSpec((_SUBLANE, LC), lambda c, i: (c, 0)),
                       pl.BlockSpec((_SUBLANE, LC), lambda c, i: (c, 0))],
        ),
        compiler_params=pltpu.CompilerParams(
            dimension_semantics=("parallel", "arbitrary"),
            vmem_limit_bytes=vmem_limit),
    )(x2d)

    # --- tiny O(C) epilogue in XLA: fold partials, fuse into scale/shift -----
    cnt = jnp.float32(rows)
    ch_sum = sums.reshape(-1, K, C).sum(axis=(0, 1))          # (C,)
    ch_sq = sqs.reshape(-1, K, C).sum(axis=(0, 1))            # (C,)
    mean = ch_sum / cnt
    var = jnp.maximum(ch_sq / cnt - mean * mean, 0.0)         # biased, clamped
    inv_std = jax.lax.rsqrt(var + jnp.float32(eps))
    scale_f = gamma.astype(jnp.float32) * inv_std[3:]
    shift_f = beta.astype(jnp.float32) - mean[3:] * scale_f
    scale_c = jnp.concatenate([jnp.ones((3,), jnp.float32), scale_f])
    shift_c = jnp.concatenate([jnp.zeros((3,), jnp.float32), shift_f])
    scale = jnp.tile(scale_c, K).reshape(1, LC)               # lane l -> ch l%C
    shift = jnp.tile(shift_c, K).reshape(1, LC)

    out2d = pl.pallas_call(
        _norm_kernel,
        out_shape=jax.ShapeDtypeStruct((R, LC), in_feature.dtype),
        grid_spec=pltpu.PrefetchScalarGridSpec(
            num_scalar_prefetch=0,
            grid=(n_tiles,),
            in_specs=[pl.BlockSpec((1, LC), lambda i: (0, 0)),      # scale
                      pl.BlockSpec((1, LC), lambda i: (0, 0)),      # shift
                      pl.BlockSpec((row_tile, LC), lambda i: (i, 0))],
            out_specs=pl.BlockSpec((row_tile, LC), lambda i: (i, 0)),
        ),
        compiler_params=pltpu.CompilerParams(
            dimension_semantics=("parallel",),
            vmem_limit_bytes=vmem_limit),
    )(scale, shift, x2d)

    return out2d.reshape(B, N, C)


def _reference(in_feature, gamma, beta, eps=1e-5):
    points = in_feature[:, :, :3]
    feat = in_feature[:, :, 3:]
    mean = jnp.mean(feat, axis=(0, 1), keepdims=True)
    var = jnp.mean((feat - mean) ** 2, axis=(0, 1), keepdims=True)  # biased
    bn = (feat - mean) * jax.lax.rsqrt(var + eps) * gamma + beta
    return jnp.concatenate([points, bn], axis=-1)


if __name__ == "__main__":
    key = jax.random.PRNGKey(0)
    keys = jax.random.split(key, 10)

    # --- Test 1: small module-sized shape, VMEM-resident single-pass path ----
    B, N, Fin = 2, 16, 8
    x = jax.random.normal(keys[0], (B, N, 3 + Fin), dtype=jnp.float32)
    gamma = jnp.ones((Fin,), jnp.float32)     # BatchNorm1d init: weight = 1
    beta = jnp.zeros((Fin,), jnp.float32)     # bias = 0
    out = jax.block_until_ready(jax.jit(field_batch_norm)(x, gamma, beta))
    ref = _reference(x, gamma, beta)
    assert out.shape == (B, N, 3 + Fin)
    assert jnp.allclose(out, ref, atol=1e-5, rtol=1e-5), "test1 mismatch"

    # --- Test 2: streaming path, narrow gcd fold, ragged last tile -----------
    B2, N2, F2 = 3, 110, 5
    x2 = 2.0 + 3.0 * jax.random.normal(keys[1], (B2, N2, 3 + F2),
                                       dtype=jnp.float32)
    g2 = jax.random.normal(keys[2], (F2,), jnp.float32)
    b2 = jax.random.normal(keys[3], (F2,), jnp.float32)
    fbn2 = jax.jit(functools.partial(field_batch_norm, row_tile=16))
    out2 = jax.block_until_ready(fbn2(x2, g2, b2))
    ref2 = _reference(x2, g2, b2)
    assert out2.shape == (B2, N2, 3 + F2)
    assert jnp.allclose(out2, ref2, atol=1e-4, rtol=1e-4), "test2 mismatch"

    # --- Test 3: streaming, lane-dense fold, ragged + forced 2-core split ----
    B3, N3, F3 = 4, 160, 5
    x3 = 0.5 + 1.5 * jax.random.normal(keys[4], (B3, N3, 3 + F3),
                                       dtype=jnp.float32)
    g3 = jax.random.normal(keys[5], (F3,), jnp.float32)
    b3 = jax.random.normal(keys[6], (F3,), jnp.float32)
    fbn3 = jax.jit(functools.partial(field_batch_norm, row_tile=16,
                                     num_cores=2))
    out3 = jax.block_until_ready(fbn3(x3, g3, b3))
    ref3 = _reference(x3, g3, b3)
    assert out3.shape == (B3, N3, 3 + F3)
    assert jnp.allclose(out3, ref3, atol=1e-4, rtol=1e-4), "test3 mismatch"

    # --- Test 4: resident path with lane-dense fold (R == 1) -----------------
    B4, N4, F4 = 2, 64, 8
    x4 = jax.random.normal(keys[7], (B4, N4, 3 + F4), dtype=jnp.float32)
    g4 = jax.random.normal(keys[8], (F4,), jnp.float32)
    b4 = jax.random.normal(keys[9], (F4,), jnp.float32)
    out4 = jax.block_until_ready(jax.jit(field_batch_norm)(x4, g4, b4))
    ref4 = _reference(x4, g4, b4)
    assert out4.shape == (B4, N4, 3 + F4)
    assert jnp.allclose(out4, ref4, atol=1e-4, rtol=1e-4), "test4 mismatch"

    # --- Test 5: forced streaming, auto row_tile, single non-8-aligned tile --
    B5, N5, F5 = 2, 352, 8
    x5 = jax.random.normal(keys[0], (B5, N5, 3 + F5), dtype=jnp.float32)
    fbn5 = jax.jit(functools.partial(field_batch_norm, use_resident=False))
    out5 = jax.block_until_ready(fbn5(x5, gamma, beta))
    ref5 = _reference(x5, gamma, beta)
    assert out5.shape == (B5, N5, 3 + F5)
    assert jnp.allclose(out5, ref5, atol=1e-5, rtol=1e-5), "test5 mismatch"

    print("KERNEL_OK")
</pallas_src>

<mosaic_0001>
module attributes {stable_mosaic.version = 11 : i64} {
  func.func @_resident_kernel(%arg0: memref<1x352xf32, #tpu.memory_space<vmem>>, %arg1: memref<1x352xf32, #tpu.memory_space<vmem>>, %arg2: memref<1x352xf32, #tpu.memory_space<vmem>>, %arg3: memref<1x352xf32, #tpu.memory_space<vmem>>, %arg4: memref<11x352xf32, #tpu.memory_space<vmem>>, %arg5: memref<1x352xf32, #tpu.memory_space<vmem>>) attributes {dimension_semantics = [], scalar_prefetch = 0 : i64, scratch_operands = 0 : i64, tpu.core_type = #tpu.core_type<tc>} {
    %c0 = arith.constant 0 : index
    %c0_0 = arith.constant 0 : index
    %0 = vector.load %arg0[%c0, %c0_0] : memref<1x352xf32, #tpu.memory_space<vmem>>, vector<1x352xf32>
    %cst = arith.constant dense<0.000000e+00> : vector<352xf32>
    %1 = vector.multi_reduction <add>, %0, %cst [0] : vector<1x352xf32> to vector<352xf32>
    %2 = vector.shape_cast %1 : vector<352xf32> to vector<1x352xf32>
    %3 = arith.mulf %0, %0 : vector<1x352xf32>
    %cst_1 = arith.constant dense<0.000000e+00> : vector<352xf32>
    %4 = vector.multi_reduction <add>, %3, %cst_1 [0] : vector<1x352xf32> to vector<352xf32>
    %5 = vector.shape_cast %4 : vector<352xf32> to vector<1x352xf32>
    %cst_2 = arith.constant 0.000000e+00 : f32
    %6 = vector.broadcast %cst_2 : f32 to vector<1x352xf32>
    %cst_3 = arith.constant 0.000000e+00 : f32
    %7 = vector.broadcast %cst_3 : f32 to vector<1x352xf32>
    %c0_4 = arith.constant 0 : index
    %c0_5 = arith.constant 0 : index
    %8 = vector.load %arg4[%c0_4, %c0_5] : memref<11x352xf32, #tpu.memory_space<vmem>>, vector<1x352xf32>
    %9 = arith.mulf %8, %2 : vector<1x352xf32>
    %cst_6 = arith.constant dense<0.000000e+00> : vector<1xf32>
    %10 = vector.multi_reduction <add>, %9, %cst_6 [1] : vector<1x352xf32> to vector<1xf32>
    %11 = vector.shape_cast %10 : vector<1xf32> to vector<1x1xf32>
    %12 = arith.mulf %8, %5 : vector<1x352xf32>
    %cst_7 = arith.constant dense<0.000000e+00> : vector<1xf32>
    %13 = vector.multi_reduction <add>, %12, %cst_7 [1] : vector<1x352xf32> to vector<1xf32>
    %14 = vector.shape_cast %13 : vector<1xf32> to vector<1x1xf32>
    %15 = vector.broadcast %11 : vector<1x1xf32> to vector<1x352xf32>
    %16 = arith.mulf %15, %8 : vector<1x352xf32>
    %17 = arith.addf %6, %16 : vector<1x352xf32>
    %18 = vector.broadcast %14 : vector<1x1xf32> to vector<1x352xf32>
    %19 = arith.mulf %18, %8 : vector<1x352xf32>
    %20 = arith.addf %7, %19 : vector<1x352xf32>
    %c1 = arith.constant 1 : index
    %c0_8 = arith.constant 0 : index
    %21 = vector.load %arg4[%c1, %c0_8] : memref<11x352xf32, #tpu.memory_space<vmem>>, vector<1x352xf32>
    %22 = arith.mulf %21, %2 : vector<1x352xf32>
    %cst_9 = arith.constant dense<0.000000e+00> : vector<1xf32>
    %23 = vector.multi_reduction <add>, %22, %cst_9 [1] : vector<1x352xf32> to vector<1xf32>
    %24 = vector.shape_cast %23 : vector<1xf32> to vector<1x1xf32>
    %25 = arith.mulf %21, %5 : vector<1x352xf32>
    %cst_10 = arith.constant dense<0.000000e+00> : vector<1xf32>
    %26 = vector.multi_reduction <add>, %25, %cst_10 [1] : vector<1x352xf32> to vector<1xf32>
    %27 = vector.shape_cast %26 : vector<1xf32> to vector<1x1xf32>
    %28 = vector.broadcast %24 : vector<1x1xf32> to vector<1x352xf32>
    %29 = arith.mulf %28, %21 : vector<1x352xf32>
    %30 = arith.addf %17, %29 : vector<1x352xf32>
    %31 = vector.broadcast %27 : vector<1x1xf32> to vector<1x352xf32>
    %32 = arith.mulf %31, %21 : vector<1x352xf32>
    %33 = arith.addf %20, %32 : vector<1x352xf32>
    %c2 = arith.constant 2 : index
    %c0_11 = arith.constant 0 : index
    %34 = vector.load %arg4[%c2, %c0_11] : memref<11x352xf32, #tpu.memory_space<vmem>>, vector<1x352xf32>
    %35 = arith.mulf %34, %2 : vector<1x352xf32>
    %cst_12 = arith.constant dense<0.000000e+00> : vector<1xf32>
    %36 = vector.multi_reduction <add>, %35, %cst_12 [1] : vector<1x352xf32> to vector<1xf32>
    %37 = vector.shape_cast %36 : vector<1xf32> to vector<1x1xf32>
    %38 = arith.mulf %34, %5 : vector<1x352xf32>
    %cst_13 = arith.constant dense<0.000000e+00> : vector<1xf32>
    %39 = vector.multi_reduction <add>, %38, %cst_13 [1] : vector<1x352xf32> to vector<1xf32>
    %40 = vector.shape_cast %39 : vector<1xf32> to vector<1x1xf32>
    %41 = vector.broadcast %37 : vector<1x1xf32> to vector<1x352xf32>
    %42 = arith.mulf %41, %34 : vector<1x352xf32>
    %43 = arith.addf %30, %42 : vector<1x352xf32>
    %44 = vector.broadcast %40 : vector<1x1xf32> to vector<1x352xf32>
    %45 = arith.mulf %44, %34 : vector<1x352xf32>
    %46 = arith.addf %33, %45 : vector<1x352xf32>
    %c3 = arith.constant 3 : index
    %c0_14 = arith.constant 0 : index
    %47 = vector.load %arg4[%c3, %c0_14] : memref<11x352xf32, #tpu.memory_space<vmem>>, vector<1x352xf32>
    %48 = arith.mulf %47, %2 : vector<1x352xf32>
    %cst_15 = arith.constant dense<0.000000e+00> : vector<1xf32>
    %49 = vector.multi_reduction <add>, %48, %cst_15 [1] : vector<1x352xf32> to vector<1xf32>
    %50 = vector.shape_cast %49 : vector<1xf32> to vector<1x1xf32>
    %51 = arith.mulf %47, %5 : vector<1x352xf32>
    %cst_16 = arith.constant dense<0.000000e+00> : vector<1xf32>
    %52 = vector.multi_reduction <add>, %51, %cst_16 [1] : vector<1x352xf32> to vector<1xf32>
    %53 = vector.shape_cast %52 : vector<1xf32> to vector<1x1xf32>
    %54 = vector.broadcast %50 : vector<1x1xf32> to vector<1x352xf32>
    %55 = arith.mulf %54, %47 : vector<1x352xf32>
    %56 = arith.addf %43, %55 : vector<1x352xf32>
    %57 = vector.broadcast %53 : vector<1x1xf32> to vector<1x352xf32>
    %58 = arith.mulf %57, %47 : vector<1x352xf32>
    %59 = arith.addf %46, %58 : vector<1x352xf32>
    %c4 = arith.constant 4 : index
    %c0_17 = arith.constant 0 : index
    %60 = vector.load %arg4[%c4, %c0_17] : memref<11x352xf32, #tpu.memory_space<vmem>>, vector<1x352xf32>
    %61 = arith.mulf %60, %2 : vector<1x352xf32>
    %cst_18 = arith.constant dense<0.000000e+00> : vector<1xf32>
    %62 = vector.multi_reduction <add>, %61, %cst_18 [1] : vector<1x352xf32> to vector<1xf32>
    %63 = vector.shape_cast %62 : vector<1xf32> to vector<1x1xf32>
    %64 = arith.mulf %60, %5 : vector<1x352xf32>
    %cst_19 = arith.constant dense<0.000000e+00> : vector<1xf32>
    %65 = vector.multi_reduction <add>, %64, %cst_19 [1] : vector<1x352xf32> to vector<1xf32>
    %66 = vector.shape_cast %65 : vector<1xf32> to vector<1x1xf32>
    %67 = vector.broadcast %63 : vector<1x1xf32> to vector<1x352xf32>
    %68 = arith.mulf %67, %60 : vector<1x352xf32>
    %69 = arith.addf %56, %68 : vector<1x352xf32>
    %70 = vector.broadcast %66 : vector<1x1xf32> to vector<1x352xf32>
    %71 = arith.mulf %70, %60 : vector<1x352xf32>
    %72 = arith.addf %59, %71 : vector<1x352xf32>
    %c5 = arith.constant 5 : index
    %c0_20 = arith.constant 0 : index
    %73 = vector.load %arg4[%c5, %c0_20] : memref<11x352xf32, #tpu.memory_space<vmem>>, vector<1x352xf32>
    %74 = arith.mulf %73, %2 : vector<1x352xf32>
    %cst_21 = arith.constant dense<0.000000e+00> : vector<1xf32>
    %75 = vector.multi_reduction <add>, %74, %cst_21 [1] : vector<1x352xf32> to vector<1xf32>
    %76 = vector.shape_cast %75 : vector<1xf32> to vector<1x1xf32>
    %77 = arith.mulf %73, %5 : vector<1x352xf32>
    %cst_22 = arith.constant dense<0.000000e+00> : vector<1xf32>
    %78 = vector.multi_reduction <add>, %77, %cst_22 [1] : vector<1x352xf32> to vector<1xf32>
    %79 = vector.shape_cast %78 : vector<1xf32> to vector<1x1xf32>
    %80 = vector.broadcast %76 : vector<1x1xf32> to vector<1x352xf32>
    %81 = arith.mulf %80, %73 : vector<1x352xf32>
    %82 = arith.addf %69, %81 : vector<1x352xf32>
    %83 = vector.broadcast %79 : vector<1x1xf32> to vector<1x352xf32>
    %84 = arith.mulf %83, %73 : vector<1x352xf32>
    %85 = arith.addf %72, %84 : vector<1x352xf32>
    %c6 = arith.constant 6 : index
    %c0_23 = arith.constant 0 : index
    %86 = vector.load %arg4[%c6, %c0_23] : memref<11x352xf32, #tpu.memory_space<vmem>>, vector<1x352xf32>
    %87 = arith.mulf %86, %2 : vector<1x352xf32>
    %cst_24 = arith.constant dense<0.000000e+00> : vector<1xf32>
    %88 = vector.multi_reduction <add>, %87, %cst_24 [1] : vector<1x352xf32> to vector<1xf32>
    %89 = vector.shape_cast %88 : vector<1xf32> to vector<1x1xf32>
    %90 = arith.mulf %86, %5 : vector<1x352xf32>
    %cst_25 = arith.constant dense<0.000000e+00> : vector<1xf32>
    %91 = vector.multi_reduction <add>, %90, %cst_25 [1] : vector<1x352xf32> to vector<1xf32>
    %92 = vector.shape_cast %91 : vector<1xf32> to vector<1x1xf32>
    %93 = vector.broadcast %89 : vector<1x1xf32> to vector<1x352xf32>
    %94 = arith.mulf %93, %86 : vector<1x352xf32>
    %95 = arith.addf %82, %94 : vector<1x352xf32>
    %96 = vector.broadcast %92 : vector<1x1xf32> to vector<1x352xf32>
    %97 = arith.mulf %96, %86 : vector<1x352xf32>
    %98 = arith.addf %85, %97 : vector<1x352xf32>
    %c7 = arith.constant 7 : index
    %c0_26 = arith.constant 0 : index
    %99 = vector.load %arg4[%c7, %c0_26] : memref<11x352xf32, #tpu.memory_space<vmem>>, vector<1x352xf32>
    %100 = arith.mulf %99, %2 : vector<1x352xf32>
    %cst_27 = arith.constant dense<0.000000e+00> : vector<1xf32>
    %101 = vector.multi_reduction <add>, %100, %cst_27 [1] : vector<1x352xf32> to vector<1xf32>
    %102 = vector.shape_cast %101 : vector<1xf32> to vector<1x1xf32>
    %103 = arith.mulf %99, %5 : vector<1x352xf32>
    %cst_28 = arith.constant dense<0.000000e+00> : vector<1xf32>
    %104 = vector.multi_reduction <add>, %103, %cst_28 [1] : vector<1x352xf32> to vector<1xf32>
    %105 = vector.shape_cast %104 : vector<1xf32> to vector<1x1xf32>
    %106 = vector.broadcast %102 : vector<1x1xf32> to vector<1x352xf32>
    %107 = arith.mulf %106, %99 : vector<1x352xf32>
    %108 = arith.addf %95, %107 : vector<1x352xf32>
    %109 = vector.broadcast %105 : vector<1x1xf32> to vector<1x352xf32>
    %110 = arith.mulf %109, %99 : vector<1x352xf32>
    %111 = arith.addf %98, %110 : vector<1x352xf32>
    %c8 = arith.constant 8 : index
    %c0_29 = arith.constant 0 : index
    %112 = vector.load %arg4[%c8, %c0_29] : memref<11x352xf32, #tpu.memory_space<vmem>>, vector<1x352xf32>
    %113 = arith.mulf %112, %2 : vector<1x352xf32>
    %cst_30 = arith.constant dense<0.000000e+00> : vector<1xf32>
    %114 = vector.multi_reduction <add>, %113, %cst_30 [1] : vector<1x352xf32> to vector<1xf32>
    %115 = vector.shape_cast %114 : vector<1xf32> to vector<1x1xf32>
    %116 = arith.mulf %112, %5 : vector<1x352xf32>
    %cst_31 = arith.constant dense<0.000000e+00> : vector<1xf32>
    %117 = vector.multi_reduction <add>, %116, %cst_31 [1] : vector<1x352xf32> to vector<1xf32>
    %118 = vector.shape_cast %117 : vector<1xf32> to vector<1x1xf32>
    %119 = vector.broadcast %115 : vector<1x1xf32> to vector<1x352xf32>
    %120 = arith.mulf %119, %112 : vector<1x352xf32>
    %121 = arith.addf %108, %120 : vector<1x352xf32>
    %122 = vector.broadcast %118 : vector<1x1xf32> to vector<1x352xf32>
    %123 = arith.mulf %122, %112 : vector<1x352xf32>
    %124 = arith.addf %111, %123 : vector<1x352xf32>
    %c9 = arith.constant 9 : index
    %c0_32 = arith.constant 0 : index
    %125 = vector.load %arg4[%c9, %c0_32] : memref<11x352xf32, #tpu.memory_space<vmem>>, vector<1x352xf32>
    %126 = arith.mulf %125, %2 : vector<1x352xf32>
    %cst_33 = arith.constant dense<0.000000e+00> : vector<1xf32>
    %127 = vector.multi_reduction <add>, %126, %cst_33 [1] : vector<1x352xf32> to vector<1xf32>
    %128 = vector.shape_cast %127 : vector<1xf32> to vector<1x1xf32>
    %129 = arith.mulf %125, %5 : vector<1x352xf32>
    %cst_34 = arith.constant dense<0.000000e+00> : vector<1xf32>
    %130 = vector.multi_reduction <add>, %129, %cst_34 [1] : vector<1x352xf32> to vector<1xf32>
    %131 = vector.shape_cast %130 : vector<1xf32> to vector<1x1xf32>
    %132 = vector.broadcast %128 : vector<1x1xf32> to vector<1x352xf32>
    %133 = arith.mulf %132, %125 : vector<1x352xf32>
    %134 = arith.addf %121, %133 : vector<1x352xf32>
    %135 = vector.broadcast %131 : vector<1x1xf32> to vector<1x352xf32>
    %136 = arith.mulf %135, %125 : vector<1x352xf32>
    %137 = arith.addf %124, %136 : vector<1x352xf32>
    %c10 = arith.constant 10 : index
    %c0_35 = arith.constant 0 : index
    %138 = vector.load %arg4[%c10, %c0_35] : memref<11x352xf32, #tpu.memory_space<vmem>>, vector<1x352xf32>
    %139 = arith.mulf %138, %2 : vector<1x352xf32>
    %cst_36 = arith.constant dense<0.000000e+00> : vector<1xf32>
    %140 = vector.multi_reduction <add>, %139, %cst_36 [1] : vector<1x352xf32> to vector<1xf32>
    %141 = vector.shape_cast %140 : vector<1xf32> to vector<1x1xf32>
    %142 = arith.mulf %138, %5 : vector<1x352xf32>
    %cst_37 = arith.constant dense<0.000000e+00> : vector<1xf32>
    %143 = vector.multi_reduction <add>, %142, %cst_37 [1] : vector<1x352xf32> to vector<1xf32>
    %144 = vector.shape_cast %143 : vector<1xf32> to vector<1x1xf32>
    %145 = vector.broadcast %141 : vector<1x1xf32> to vector<1x352xf32>
    %146 = arith.mulf %145, %138 : vector<1x352xf32>
    %147 = arith.addf %134, %146 : vector<1x352xf32>
    %148 = vector.broadcast %144 : vector<1x1xf32> to vector<1x352xf32>
    %149 = arith.mulf %148, %138 : vector<1x352xf32>
    %150 = arith.addf %137, %149 : vector<1x352xf32>
    %cst_38 = arith.constant 3.125000e-02 : f32
    %151 = vector.broadcast %cst_38 : f32 to vector<1x352xf32>
    %152 = arith.mulf %147, %151 : vector<1x352xf32>
    %cst_39 = arith.constant 3.125000e-02 : f32
    %153 = vector.broadcast %cst_39 : f32 to vector<1x352xf32>
    %154 = arith.mulf %150, %153 : vector<1x352xf32>
    %155 = arith.mulf %152, %152 : vector<1x352xf32>
    %156 = arith.subf %154, %155 : vector<1x352xf32>
    %cst_40 = arith.constant 0.000000e+00 : f32
    %157 = vector.broadcast %cst_40 : f32 to vector<1x352xf32>
    %158 = arith.maximumf %156, %157 : vector<1x352xf32>
    %cst_41 = arith.constant 9.99999974E-6 : f32
    %159 = vector.broadcast %cst_41 : f32 to vector<1x352xf32>
    %160 = arith.addf %158, %159 : vector<1x352xf32>
    %161 = math.rsqrt %160 : vector<1x352xf32>
    %c0_42 = arith.constant 0 : index
    %c0_43 = arith.constant 0 : index
    %162 = vector.load %arg3[%c0_42, %c0_43] : memref<1x352xf32, #tpu.memory_space<vmem>>, vector<1x352xf32>
    %cst_44 = arith.constant 0.000000e+00 : f32
    %163 = vector.broadcast %cst_44 : f32 to vector<1x352xf32>
    %164 = arith.cmpf ogt, %162, %163 : vector<1x352xf32>
    %c0_45 = arith.constant 0 : index
    %c0_46 = arith.constant 0 : index
    %165 = vector.load %arg1[%c0_45, %c0_46] : memref<1x352xf32, #tpu.memory_space<vmem>>, vector<1x352xf32>
    %166 = arith.mulf %165, %161 : vector<1x352xf32>
    %cst_47 = arith.constant 1.000000e+00 : f32
    %167 = vector.broadcast %cst_47 : f32 to vector<1x352xf32>
    %168 = arith.select %164, %166, %167 : vector<1x352xi1>, vector<1x352xf32>
    %cst_48 = arith.constant 0.000000e+00 : f32
    %169 = vector.broadcast %cst_48 : f32 to vector<1x352xf32>
    %170 = arith.cmpf ogt, %162, %169 : vector<1x352xf32>
    %c0_49 = arith.constant 0 : index
    %c0_50 = arith.constant 0 : index
    %171 = vector.load %arg2[%c0_49, %c0_50] : memref<1x352xf32, #tpu.memory_space<vmem>>, vector<1x352xf32>
    %172 = arith.mulf %152, %168 : vector<1x352xf32>
    %173 = arith.subf %171, %172 : vector<1x352xf32>
    %cst_51 = arith.constant 0.000000e+00 : f32
    %174 = vector.broadcast %cst_51 : f32 to vector<1x352xf32>
    %175 = arith.select %170, %173, %174 : vector<1x352xi1>, vector<1x352xf32>
    %176 = arith.mulf %0, %168 : vector<1x352xf32>
    %177 = arith.addf %176, %175 : vector<1x352xf32>
    %c0_52 = arith.constant 0 : index
    %c0_53 = arith.constant 0 : index
    %178 = vector.load %arg5[%c0_52, %c0_53] : memref<1x352xf32, #tpu.memory_space<vmem>>, vector<1x352xf32>
    tpu.vector_store %arg5[%c0_52, %c0_53], %177 {strides = array<i32>} : memref<1x352xf32, #tpu.memory_space<vmem>>, vector<1x352xf32>,
    return
  }
}

</mosaic_0001>

<bundles_post_ra>
// kernel: tile.28
= control target key start
LH: loop header
LB: loop body
LE: loop exit
PB: predicated region body
PF: predicated region fallthrough
CT: control target
= control target key end

     0   :  { %s40_s0 = inlined_call_operand.vmem [shape: f32[11], index: 0, kind: input, shape index: {}]   ;;  %s41_s1 = inlined_call_operand.vmem [shape: f32[32,11], index: 1, kind: output, shape index: {}]  }
   0x1   :  { %v4_v0 = vld [vmem:[%s40_s0] ss:$0 sm:$0xff] }
   0x2   :  { %5 = vst [vmem:[%s41_s1] sm:$0xff] %v4_v0  ;;  %12 = vst [vmem:[%s41_s1 + $0x8] sm:$0xff] %v4_v0 }
   0x3   :  { %13 = vst [vmem:[%s41_s1 + $0x10] sm:$0xff] %v4_v0  ;;  %14 = vst [vmem:[%s41_s1 + $0x18] sm:$0xff] %v4_v0 }

// kernel: tile.31
= control target key start
LH: loop header
LB: loop body
LE: loop exit
PB: predicated region body
PF: predicated region fallthrough
CT: control target
= control target key end

     0   :  { %vm10_vm0 = vcmask 23552   ;;  %vm24_vm1 = vcmask 56320   ;;  %s343_s14 = smov 125   ;;  %s344_s15 = smov 114   ;;  %vm4_vm2 = vcmask 89088   ;;  %s499_s0 = inlined_call_operand.vmem [shape: f32[32,11], index: 0, kind: input, shape index: {}]   ;;  %s500_s1 = inlined_call_operand.hbm [shape: f32[1,352], index: 1, kind: output, shape index: {}]  }
   0x1   :  { %v254_v0 = vld [vmem:[%s499_s0 + $0x17] sm:$0x1]   ;;  %v258_v3 = vld [vmem:[%s499_s0 + $0x16] sm:$0x1]   ;;  %v256_v4 = vld [vmem:[%s499_s0 + $0xb] sm:$0x1]  }
   0x2   :  { %v255_v1 = vld [vmem:[%s499_s0 + $0x17] sm:$0x1]   ;;  %35 = vrot.lane.b32.xlu1 %v258_v3, %s344_s15  ;;  %v257_v5 = vld [vmem:[%s499_s0 + $0xb] sm:$0x1]   ;;  %v259_v7 = vld [vmem:[%s499_s0 + $0xa] sm:$0x1]  }
   0x3   :  { %v11_v2 = vsel %vm10_vm0, %v255_v1, %v254_v0  ;;  %v25_v6 = vsel %vm24_vm1, %v257_v5, %v256_v4  ;;  %s345_s20 = smov 121   ;;  %s346_s21 = smov 110   ;;  %v260_v8 = vld [vmem:[%s499_s0 + $0x15] sm:$0x1]   ;;  %v261_v9 = vld [vmem:[%s499_s0 + $0x9] sm:$0x1]  }
   0x4   :  { %12 = vrot.lane.b32.xlu0 %v11_v2, %s343_s14  ;;  %s347_s26 = smov 103   ;;  %s348_s27 = smov 99   ;;  %v262_v10 = vld [vmem:[%s499_s0 + $0x14] sm:$0x1]   ;;  %v263_v11 = vld [vmem:[%s499_s0 + $0x8] sm:$0x1]  }
   0x5   :  { %s349_s3 = smov 92   ;;  %s350_s4 = smov 88   ;;  %v264_v12 = vld [vmem:[%s499_s0 + $0x1f] sm:$0x1]   ;;  %v265_v13 = vld [vmem:[%s499_s0 + $0x13] sm:$0x1]  }
   0x6   :  { %42 = vrot.lane.b32.xlu1 %v259_v7, %s346_s21  ;;  %v3_v14 = vld [vmem:[%s499_s0] sm:$0x1]   ;;  %s351_s11 = smov 85   ;;  %s352_s12 = smov 81  }
   0x7   :  { %5 = vst.msk [vmem:[#allocation2] sm:$0x1] %vm4_vm2, %v3_v14  }
   0x8   :  { %26 = vrot.lane.b32.xlu0 %v25_v6, %s345_s20 }
   0xa   :  { %55 = vrot.lane.b32.xlu1 %v261_v9, %s348_s27 }
   0xc   :  { %48 = vrot.lane.b32.xlu0 %v260_v8, %s347_s26 }
   0xe   :  { %68 = vrot.lane.b32.xlu1 %v263_v11, %s350_s4 }
  0x10   :  { %61 = vrot.lane.b32.xlu0 %v262_v10, %s349_s3 }
  0x12   :  { %81 = vrot.lane.b32.xlu1 %v265_v13, %s352_s12 }
  0x14   :  { %74 = vrot.lane.b32.xlu0 %v264_v12, %s351_s11 }
  0x15   :  { %2 = vsyncpa [#allocation1], 0  ;;  %v266_v15 = vld [vmem:[%s499_s0 + $0x7] sm:$0x1]   ;;  %v267_v16 = vld [vmem:[%s499_s0 + $0x1e] sm:$0x1]  }
  0x16   :  { %s353_s17 = smov 77   ;;  %s354_s18 = smov 74   ;;  %v268_v17 = vld [vmem:[%s499_s0 + $0x12] sm:$0x1]   ;;  %v269_v18 = vld [vmem:[%s499_s0 + $0x6] sm:$0x1]  }
  0x17   :  { %94 = vrot.lane.b32.xlu1 %v267_v16, %s354_s18  ;;  %s355_s23 = smov 70   ;;  %s356_s24 = smov 66   ;;  %v270_v19 = vld [vmem:[%s499_s0 + $0x1d] sm:$0x1]   ;;  %v271_v20 = vld [vmem:[%s499_s0 + $0x11] sm:$0x1]  }
  0x18   :  { %88 = vrot.lane.b32.xlu0 %v266_v15, %s353_s17  ;;  %s357_s29 = smov 63   ;;  %s358_s30 = smov 59   ;;  %v272_v21 = vld [vmem:[%s499_s0 + $0x5] sm:$0x1]   ;;  %v273_v22 = vld [vmem:[%s499_s0 + $0x1c] sm:$0x1]  }
  0x19   :  { %s359_s6 = smov 55   ;;  %s360_s7 = smov 52   ;;  %v274_v23 = vld [vmem:[%s499_s0 + $0x10] sm:$0x1]   ;;  %v275_v24 = vld [vmem:[%s499_s0 + $0x4] sm:$0x1]  }
  0x1a   :  { %s361_s12 = smov 48   ;;  %s362_s13 = smov 44   ;;  %v276_v25 = vld [vmem:[%s499_s0 + $0x1b] sm:$0x1]   ;;  %v277_v26 = vld [vmem:[%s499_s0 + $0xf] sm:$0x1]  }
  0x1b   :  { %108 = vrot.lane.b32.xlu1 %v269_v18, %s356_s24  ;;  %s363_s18 = smov 41   ;;  %s364_s19 = smov 37   ;;  %v278_v27 = vld [vmem:[%s499_s0 + $0x3] sm:$0x1]   ;;  %v279_v28 = vld [vmem:[%s499_s0 + $0x1a] sm:$0x1]  }
  0x1c   :  { %101 = vrot.lane.b32.xlu0 %v268_v17, %s355_s23  ;;  %s365_s24 = smov 33   ;;  %s366_s25 = smov 30   ;;  %v280_v29 = vld [vmem:[%s499_s0 + $0xe] sm:$0x1]   ;;  %v281_v30 = vld [vmem:[%s499_s0 + $0x2] sm:$0x1]  }
  0x1d   :  { %s368_s2 = smov 22   ;;  %v282_v31 = vld [vmem:[%s499_s0 + $0x19] sm:$0x1]   ;;  %v283_v32 = vld [vmem:[%s499_s0 + $0xd] sm:$0x1]   ;;  %s370_s8 = smov 15  }
  0x1e   :  { %v284_v33 = vld [vmem:[%s499_s0 + $0x1] sm:$0x1]   ;;  %v285_v34 = vld [vmem:[%s499_s0 + $0x18] sm:$0x1]   ;;  %s372_s14 = smov 8   ;;  %vm14_vm3 = vcmask 64512  }
  0x1f   :  { %121 = vrot.lane.b32.xlu1 %v271_v20, %s358_s30  ;;  %s367_s30 = smov 26   ;;  %v286_v35 = vld [vmem:[%s499_s0 + $0xc] sm:$0x1]   ;;  %s373_s0 = smov 4   ;;  %vm17_vm4 = vcmask 1048552   ;;  %vm28_vm5 = vcmask 31744  }
  0x20   :  { %114 = vrot.lane.b32.xlu0 %v270_v19, %s357_s29  ;;  %vm31_vm6 = vcmask 1048520   ;;  %vm37_vm7 = vcmask 1023888   ;;  %vm44_vm8 = vcmask 991088   ;;  %vm50_vm9 = vcmask 933688   ;;  %s374_s17 = smov [#allocation0]  }
  0x21   :  { %vm57_vm10 = vcmask 900888   ;;  %vm63_vm11 = vcmask 843488   ;;  %vm70_vm12 = vcmask 810688   ;;  %vm76_vm13 = vcmask 786088  }
  0x22   :  { %vm83_vm14 = vcmask 753288   ;;  %vm90_vm15 = vcmask 720488   ;;  %vm96_vm0 = vcmask 695888   ;;  %vm103_vm1 = vcmask 663088  }
  0x23   :  { %134 = vrot.lane.b32.xlu1 %v273_v22, %s360_s7  ;;  %s369_s7 = smov 19   ;;  %vm110_vm2 = vcmask 630288  }
  0x24   :  { %128 = vrot.lane.b32.xlu0 %v272_v21, %s359_s6 }
  0x27   :  { %148 = vrot.lane.b32.xlu1 %v275_v24, %s362_s13  ;;  %s371_s13 = smov 11  }
  0x28   :  { %141 = vrot.lane.b32.xlu0 %v274_v23, %s361_s12 }
  0x2b   :  { %161 = vrot.lane.b32.xlu1 %v277_v26, %s364_s19 }
  0x2c   :  { %154 = vrot.lane.b32.xlu0 %v276_v25, %s363_s18  ;;  %s247_s18 = sshll.u32 %s374_s17, 4  ;;  %s248_s18 = int_to_ptr.vmem [resolvable:$true] %s247_s18 }
  0x2d   :  { %s319_s19 = scalar_lea.vmem %s248_s18, 48  ;;  %s323_s20 = scalar_lea.vmem %s248_s18, 64 }
  0x2e   :  { %p320_p0 = scmp.ne.s32.totalorder %s248_s18, %s319_s19  ;;  %p324_p1 = scmp.lt.s32.totalorder %s248_s18, %s248_s18 }
  0x2f   :  { %174 = vrot.lane.b32.xlu1 %v279_v28, %s366_s25  ;;  %p325_p2 = scmp.lt.s32.totalorder %s323_s20, %s319_s19 }
  0x30   :  { %168 = vrot.lane.b32.xlu0 %v278_v27, %s365_s24 }
  0x31   :  { %p326_p3 = por %p325_p2, %p324_p1 }
  0x33   :  { %188 = vrot.lane.b32.xlu1 %v281_v30, %s368_s2  ;;  %p327_p4 = pnand %p326_p3, %p320_p0 }
  0x34   :  { %181 = vrot.lane.b32.xlu0 %v280_v29, %s367_s30 }
  0x37   :  { %201 = vrot.lane.b32.xlu1 %v283_v32, %s370_s8 }
  0x38   :  { %194 = vrot.lane.b32.xlu0 %v282_v31, %s369_s7 }
  0x3b   :  { %214 = vrot.lane.b32.xlu1 %v285_v34, %s372_s14 }
  0x3c   :  { %208 = vrot.lane.b32.xlu0 %v284_v33, %s371_s13 }
  0x40   :  { %221 = vrot.lane.b32.xlu0 %v286_v35, %s373_s0 }
  0x74   :  { %v36_v37 = vpop.permute.xlu1 %35  }
  0x76   :  { %v13_v36 = vpop.permute.xlu0 %12  }
  0x77   :  { %16 = vst.msk [vmem:[#allocation2 + $0x10] sm:$0x1] %vm14_vm3, %v13_v36   ;;  %vm116_vm3 = vcmask 605688  }
  0x78   :  { %19 = vst.msk [vmem:[#allocation2 + $0x8] sm:$0x1] %vm17_vm4, %v13_v36   ;;  %v43_v39 = vpop.permute.xlu1 %42   ;;  %vm123_vm4 = vcmask 572888  }
  0x7a   :  { %v27_v38 = vpop.permute.xlu0 %26  }
  0x7b   :  { %30 = vst.msk [vmem:[#allocation2 + $0x8] sm:$0x1] %vm28_vm5, %v27_v38   ;;  %vm130_vm5 = vcmask 540088  }
  0x7c   :  { %32 = vst.msk [vmem:[#allocation2] sm:$0x1] %vm31_vm6, %v27_v38   ;;  %v56_v41 = vpop.permute.xlu1 %55   ;;  %vm136_vm6 = vcmask 515488  }
  0x7d   :  { %39 = vst.msk [vmem:[#allocation2 + $0x8] sm:$0x1] %vm37_vm7, %v36_v37   ;;  %vm143_vm7 = vcmask 482688  }
  0x7e   :  { %45 = vst.msk [vmem:[#allocation2] sm:$0x1] %vm44_vm8, %v43_v39   ;;  %v49_v40 = vpop.permute.xlu0 %48   ;;  %vm150_vm8 = vcmask 449888  }
  0x7f   :  { %52 = vst.msk [vmem:[#allocation2 + $0x8] sm:$0x1] %vm50_vm9, %v49_v40   ;;  %vm156_vm9 = vcmask 425288  }
  0x80   :  { %58 = vst.msk [vmem:[#allocation2] sm:$0x1] %vm57_vm10, %v56_v41   ;;  %v69_v43 = vpop.permute.xlu1 %68   ;;  %vm163_vm10 = vcmask 392488  }
  0x81   :  { %71 = vst.msk [vmem:[#allocation2] sm:$0x1] %vm70_vm12, %v69_v43   ;;  %vm176_vm12 = vcmask 335088  }
  0x82   :  { %v62_v42 = vpop.permute.xlu0 %61  }
  0x83   :  { %65 = vst.msk [vmem:[#allocation2 + $0x8] sm:$0x1] %vm63_vm11, %v62_v42   ;;  %vm170_vm11 = vcmask 359688  }
  0x84   :  { %v82_v45 = vpop.permute.xlu1 %81  }
  0x85   :  { %85 = vst.msk [vmem:[#allocation2 + $0x8] sm:$0x1] %vm83_vm14, %v82_v45   ;;  %vm190_vm14 = vcmask 269488  }
  0x86   :  { %v75_v44 = vpop.permute.xlu0 %74  }
  0x87   :  { %78 = vst.msk [vmem:[#allocation2 + $0x10] sm:$0x1] %vm76_vm13, %v75_v44   ;;  %vm183_vm13 = vcmask 302288  }
  0x89   :  { %v95_v47 = vpop.permute.xlu1 %94  }
  0x8a   :  { %v89_v46 = vpop.permute.xlu0 %88   ;;  %98 = vst.msk [vmem:[#allocation2 + $0x10] sm:$0x1] %vm96_vm0, %v95_v47   ;;  %vm203_vm0 = vcmask 212088  }
  0x8b   :  { %91 = vst.msk [vmem:[#allocation2] sm:$0x1] %vm90_vm15, %v89_v46   ;;  %vm196_vm15 = vcmask 244888  }
  0x8d   :  { %v109_v49 = vpop.permute.xlu1 %108  }
  0x8e   :  { %v102_v48 = vpop.permute.xlu0 %101   ;;  %111 = vst.msk [vmem:[#allocation2] sm:$0x1] %vm110_vm2, %v109_v49   ;;  %vm216_vm2 = vcmask 154688  }
  0x8f   :  { %105 = vst.msk [vmem:[#allocation2 + $0x8] sm:$0x1] %vm103_vm1, %v102_v48   ;;  %vm210_vm1 = vcmask 179288  }
  0x91   :  { %v122_v51 = vpop.permute.xlu1 %121  }
  0x92   :  { %v115_v50 = vpop.permute.xlu0 %114   ;;  %125 = vst.msk [vmem:[#allocation2 + $0x8] sm:$0x1] %vm123_vm4, %v122_v51  }
  0x93   :  { %118 = vst.msk [vmem:[#allocation2 + $0x10] sm:$0x1] %vm116_vm3, %v115_v50   ;;  %vm223_vm3 = vcmask 121888  }
  0x95   :  { %v135_v53 = vpop.permute.xlu1 %134  }
  0x96   :  { %v129_v52 = vpop.permute.xlu0 %128   ;;  %138 = vst.msk [vmem:[#allocation2 + $0x10] sm:$0x1] %vm136_vm6, %v135_v53  }
  0x97   :  { %131 = vst.msk [vmem:[#allocation2] sm:$0x1] %vm130_vm5, %v129_v52  }
  0x99   :  { %v149_v55 = vpop.permute.xlu1 %148  }
  0x9a   :  { %v142_v54 = vpop.permute.xlu0 %141   ;;  %151 = vst.msk [vmem:[#allocation2] sm:$0x1] %vm150_vm8, %v149_v55  }
  0x9b   :  { %145 = vst.msk [vmem:[#allocation2 + $0x8] sm:$0x1] %vm143_vm7, %v142_v54  }
  0x9d   :  { %v162_v57 = vpop.permute.xlu1 %161  }
  0x9e   :  { %v155_v56 = vpop.permute.xlu0 %154   ;;  %165 = vst.msk [vmem:[#allocation2 + $0x8] sm:$0x1] %vm163_vm10, %v162_v57  }
  0x9f   :  { %158 = vst.msk [vmem:[#allocation2 + $0x10] sm:$0x1] %vm156_vm9, %v155_v56  }
  0xa1   :  { %v175_v59 = vpop.permute.xlu1 %174  }
  0xa2   :  { %v169_v58 = vpop.permute.xlu0 %168   ;;  %178 = vst.msk [vmem:[#allocation2 + $0x10] sm:$0x1] %vm176_vm12, %v175_v59  }
  0xa3   :  { %171 = vst.msk [vmem:[#allocation2] sm:$0x1] %vm170_vm11, %v169_v58  }
  0xa5   :  { %v189_v61 = vpop.permute.xlu1 %188  }
  0xa6   :  { %v182_v60 = vpop.permute.xlu0 %181   ;;  %191 = vst.msk [vmem:[#allocation2] sm:$0x1] %vm190_vm14, %v189_v61  }
  0xa7   :  { %185 = vst.msk [vmem:[#allocation2 + $0x8] sm:$0x1] %vm183_vm13, %v182_v60  }
  0xa9   :  { %v202_v63 = vpop.permute.xlu1 %201  }
  0xaa   :  { %v195_v62 = vpop.permute.xlu0 %194   ;;  %205 = vst.msk [vmem:[#allocation2 + $0x8] sm:$0x1] %vm203_vm0, %v202_v63  }
  0xab   :  { %198 = vst.msk [vmem:[#allocation2 + $0x10] sm:$0x1] %vm196_vm15, %v195_v62  }
  0xad   :  { %v215_v1 = vpop.permute.xlu1 %214  }
  0xae   :  { %v209_v0 = vpop.permute.xlu0 %208   ;;  %218 = vst.msk [vmem:[#allocation2 + $0x10] sm:$0x1] %vm216_vm2, %v215_v1  }
  0xaf   :  { %211 = vst.msk [vmem:[#allocation2] sm:$0x1] %vm210_vm1, %v209_v0  }
  0xb2   :  { %v222_v2 = vpop.permute.xlu0 %221  }
  0xb3   :  { %225 = vst.msk [vmem:[#allocation2 + $0x8] sm:$0x1] %vm223_vm3, %v222_v2  }
  0xb5   :  { %v238_v4 = vld [vmem:[#allocation2 + $0x10] sm:$0x1] }
  0xb6   :  { %v229_v3 = vld [vmem:[#allocation2] sm:$0x1]  ;;  %242 = vst [vmem:[#allocation0 + $0x2] sm:$0x1] %v238_v4 }
  0xb7   :  { %231 = vst [vmem:[#allocation0] sm:$0x1] %v229_v3 }
  0xba   :  { %v233_v5 = vld [vmem:[#allocation2 + $0x8] sm:$0x1] }
  0xbb   :  { %236 = vst [vmem:[#allocation0 + $0x1] sm:$0x1] %v233_v5 }
  0xbc   :  { %330 = shalt.err (!%p327_p4)
}
  0xbd   :  { %s331_s23 = scalar_lea.hbm %s500_s1, 48 }
  0xbe   :  { %p332_p5 = scmp.ne.s32.totalorder %s500_s1, %s331_s23  ;;  %p335_p6 = scmp.lt.u32.totalorder %s331_s23, %s500_s1 }
  0xc0   :  { %p337_p7 = pnand %p335_p6, %p332_p5 }
  0xc2   :  { %340 = shalt.err (!%p337_p7)
}
  0xc3   :  { %250 = dma.vmem_to_hbm [thread:$0]  %s248_s18, 48, %s500_s1, [#allocation1]  }
  0xc4   :  { %341 = dma.done.wait [#allocation1], 48  }
  0xc5   :  { %342 = vsyncadd [#allocation1], 4294967248 }
  0xc6   :  { %252 = vsyncpa [#allocation1], 1 }

// kernel: eq.8
= control target key start
LH: loop header
LB: loop body
LE: loop exit
PB: predicated region body
PF: predicated region fallthrough
CT: control target
= control target key end

     0   :  { %vm9_vm0 = vcmask 23552   ;;  %vm23_vm1 = vcmask 56320   ;;  %s295_s14 = smov 125   ;;  %s296_s15 = smov 114   ;;  %vm3_vm2 = vcmask 89088   ;;  %vm13_vm3 = vcmask 64512   ;;  %s441_s0 = inlined_call_operand.vmem [shape: s32[32,11], index: 0, kind: input, shape index: {}]   ;;  %s442_s1 = inlined_call_operand.vmem [shape: s32[352], index: 1, kind: output, shape index: {}]  }
   0x1   :  { %v231_v0 = vld [vmem:[%s441_s0 + $0x17] sm:$0x1]   ;;  %v235_v3 = vld [vmem:[%s441_s0 + $0x16] sm:$0x1]   ;;  %v233_v4 = vld [vmem:[%s441_s0 + $0xb] sm:$0x1]  }
   0x2   :  { %v232_v1 = vld [vmem:[%s441_s0 + $0x17] sm:$0x1]   ;;  %34 = vrot.lane.b32.xlu1 %v235_v3, %s296_s15  ;;  %v234_v5 = vld [vmem:[%s441_s0 + $0xb] sm:$0x1]   ;;  %v236_v7 = vld [vmem:[%s441_s0 + $0xa] sm:$0x1]  }
   0x3   :  { %v10_v2 = vsel %vm9_vm0, %v232_v1, %v231_v0  ;;  %v24_v6 = vsel %vm23_vm1, %v234_v5, %v233_v4  ;;  %s297_s20 = smov 121   ;;  %s298_s21 = smov 110   ;;  %v237_v8 = vld [vmem:[%s441_s0 + $0x15] sm:$0x1]   ;;  %v238_v9 = vld [vmem:[%s441_s0 + $0x9] sm:$0x1]  }
   0x4   :  { %11 = vrot.lane.b32.xlu0 %v10_v2, %s295_s14  ;;  %s299_s26 = smov 103   ;;  %s300_s27 = smov 99   ;;  %v239_v10 = vld [vmem:[%s441_s0 + $0x14] sm:$0x1]   ;;  %v240_v11 = vld [vmem:[%s441_s0 + $0x8] sm:$0x1]  }
   0x5   :  { %s301_s3 = smov 92   ;;  %s302_s4 = smov 88   ;;  %v241_v12 = vld [vmem:[%s441_s0 + $0x1f] sm:$0x1]   ;;  %v242_v13 = vld [vmem:[%s441_s0 + $0x13] sm:$0x1]  }
   0x6   :  { %41 = vrot.lane.b32.xlu1 %v236_v7, %s298_s21  ;;  %v2_v14 = vld [vmem:[%s441_s0] sm:$0x1]   ;;  %s303_s11 = smov 85   ;;  %s304_s12 = smov 81   ;;  %v243_v15 = vld [vmem:[%s441_s0 + $0x7] sm:$0x1]  }
   0x7   :  { %4 = vst.msk [vmem:[#allocation0] sm:$0x1] %vm3_vm2, %v2_v14   ;;  %v244_v16 = vld [vmem:[%s441_s0 + $0x1e] sm:$0x1]   ;;  %s305_s17 = smov 77   ;;  %s306_s18 = smov 74  }
   0x8   :  { %25 = vrot.lane.b32.xlu0 %v24_v6, %s297_s20  ;;  %v245_v17 = vld [vmem:[%s441_s0 + $0x12] sm:$0x1]   ;;  %v246_v18 = vld [vmem:[%s441_s0 + $0x6] sm:$0x1]   ;;  %s307_s23 = smov 70   ;;  %s308_s24 = smov 66  }
   0x9   :  { %v247_v19 = vld [vmem:[%s441_s0 + $0x1d] sm:$0x1]   ;;  %v248_v20 = vld [vmem:[%s441_s0 + $0x11] sm:$0x1]   ;;  %s309_s29 = smov 63   ;;  %s310_s30 = smov 59  }
   0xa   :  { %54 = vrot.lane.b32.xlu1 %v238_v9, %s300_s27  ;;  %v249_v21 = vld [vmem:[%s441_s0 + $0x5] sm:$0x1]   ;;  %v250_v22 = vld [vmem:[%s441_s0 + $0x1c] sm:$0x1]   ;;  %s311_s6 = smov 55   ;;  %s312_s7 = smov 52  }
   0xb   :  { %v251_v23 = vld [vmem:[%s441_s0 + $0x10] sm:$0x1]   ;;  %v252_v24 = vld [vmem:[%s441_s0 + $0x4] sm:$0x1]   ;;  %s314_s13 = smov 44   ;;  %s316_s19 = smov 37  }
   0xc   :  { %47 = vrot.lane.b32.xlu0 %v237_v8, %s299_s26  ;;  %v253_v25 = vld [vmem:[%s441_s0 + $0x1b] sm:$0x1]   ;;  %v254_v26 = vld [vmem:[%s441_s0 + $0xf] sm:$0x1]   ;;  %v255_v27 = vld [vmem:[%s441_s0 + $0x3] sm:$0x1]  }
   0xd   :  { %v256_v28 = vld [vmem:[%s441_s0 + $0x1a] sm:$0x1]   ;;  %s318_s25 = smov 30   ;;  %v257_v29 = vld [vmem:[%s441_s0 + $0xe] sm:$0x1]   ;;  %s320_s2 = smov 22  }
   0xe   :  { %67 = vrot.lane.b32.xlu1 %v240_v11, %s302_s4  ;;  %v258_v30 = vld [vmem:[%s441_s0 + $0x2] sm:$0x1]   ;;  %v259_v31 = vld [vmem:[%s441_s0 + $0x19] sm:$0x1]   ;;  %v260_v32 = vld [vmem:[%s441_s0 + $0xd] sm:$0x1]  }
   0xf   :  { %s322_s8 = smov 15   ;;  %v261_v33 = vld [vmem:[%s441_s0 + $0x1] sm:$0x1]   ;;  %v262_v34 = vld [vmem:[%s441_s0 + $0x18] sm:$0x1]   ;;  %s324_s14 = smov 8  }
  0x10   :  { %60 = vrot.lane.b32.xlu0 %v239_v10, %s301_s3  ;;  %v263_v35 = vld [vmem:[%s441_s0 + $0xc] sm:$0x1]   ;;  %s325_s0 = smov 4   ;;  %vm16_vm4 = vcmask 1048552   ;;  %vm27_vm5 = vcmask 31744   ;;  %vm30_vm6 = vcmask 1048520  }
  0x11   :  { %vm36_vm7 = vcmask 1023888   ;;  %vm43_vm8 = vcmask 991088   ;;  %vm49_vm9 = vcmask 933688   ;;  %vm56_vm10 = vcmask 900888  }
  0x12   :  { %80 = vrot.lane.b32.xlu1 %v242_v13, %s304_s12  ;;  %s313_s12 = smov 48   ;;  %vm62_vm11 = vcmask 843488   ;;  %vm69_vm12 = vcmask 810688   ;;  %vm75_vm13 = vcmask 786088   ;;  %vm82_vm14 = vcmask 753288  }
  0x13   :  { %vm89_vm15 = vcmask 720488   ;;  %vm95_vm0 = vcmask 695888   ;;  %vm102_vm1 = vcmask 663088   ;;  %vm109_vm2 = vcmask 630288  }
  0x14   :  { %73 = vrot.lane.b32.xlu0 %v241_v12, %s303_s11 }
  0x16   :  { %93 = vrot.lane.b32.xlu1 %v244_v16, %s306_s18  ;;  %s315_s18 = smov 41  }
  0x18   :  { %87 = vrot.lane.b32.xlu0 %v243_v15, %s305_s17 }
  0x1a   :  { %107 = vrot.lane.b32.xlu1 %v246_v18, %s308_s24  ;;  %s317_s24 = smov 33  }
  0x1c   :  { %100 = vrot.lane.b32.xlu0 %v245_v17, %s307_s23 }
  0x1e   :  { %120 = vrot.lane.b32.xlu1 %v248_v20, %s310_s30  ;;  %s319_s30 = smov 26  }
  0x20   :  { %113 = vrot.lane.b32.xlu0 %v247_v19, %s309_s29 }
  0x22   :  { %133 = vrot.lane.b32.xlu1 %v250_v22, %s312_s7  ;;  %s321_s7 = smov 19  }
  0x24   :  { %127 = vrot.lane.b32.xlu0 %v249_v21, %s311_s6 }
  0x26   :  { %147 = vrot.lane.b32.xlu1 %v252_v24, %s314_s13  ;;  %s323_s13 = smov 11  }
  0x28   :  { %140 = vrot.lane.b32.xlu0 %v251_v23, %s313_s12 }
  0x2a   :  { %160 = vrot.lane.b32.xlu1 %v254_v26, %s316_s19 }
  0x2c   :  { %153 = vrot.lane.b32.xlu0 %v253_v25, %s315_s18 }
  0x2e   :  { %173 = vrot.lane.b32.xlu1 %v256_v28, %s318_s25 }
  0x30   :  { %167 = vrot.lane.b32.xlu0 %v255_v27, %s317_s24 }
  0x32   :  { %187 = vrot.lane.b32.xlu1 %v258_v30, %s320_s2 }
  0x34   :  { %180 = vrot.lane.b32.xlu0 %v257_v29, %s319_s30 }
  0x36   :  { %200 = vrot.lane.b32.xlu1 %v260_v32, %s322_s8 }
  0x38   :  { %193 = vrot.lane.b32.xlu0 %v259_v31, %s321_s7 }
  0x3a   :  { %213 = vrot.lane.b32.xlu1 %v262_v34, %s324_s14 }
  0x3c   :  { %207 = vrot.lane.b32.xlu0 %v261_v33, %s323_s13 }
  0x40   :  { %220 = vrot.lane.b32.xlu0 %v263_v35, %s325_s0 }
  0x74   :  { %v35_v37 = vpop.permute.xlu1 %34  }
  0x76   :  { %v12_v36 = vpop.permute.xlu0 %11  }
  0x77   :  { %15 = vst.msk [vmem:[#allocation0 + $0x2] sm:$0x1] %vm13_vm3, %v12_v36   ;;  %vm115_vm3 = vcmask 605688  }
  0x78   :  { %18 = vst.msk [vmem:[#allocation0 + $0x1] sm:$0x1] %vm16_vm4, %v12_v36   ;;  %v42_v39 = vpop.permute.xlu1 %41   ;;  %vm122_vm4 = vcmask 572888  }
  0x7a   :  { %v26_v38 = vpop.permute.xlu0 %25  }
  0x7b   :  { %29 = vst.msk [vmem:[#allocation0 + $0x1] sm:$0x1] %vm27_vm5, %v26_v38   ;;  %vm129_vm5 = vcmask 540088  }
  0x7c   :  { %31 = vst.msk [vmem:[#allocation0] sm:$0x1] %vm30_vm6, %v26_v38   ;;  %v55_v41 = vpop.permute.xlu1 %54   ;;  %vm135_vm6 = vcmask 515488  }
  0x7d   :  { %38 = vst.msk [vmem:[#allocation0 + $0x1] sm:$0x1] %vm36_vm7, %v35_v37   ;;  %vm142_vm7 = vcmask 482688  }
  0x7e   :  { %44 = vst.msk [vmem:[#allocation0] sm:$0x1] %vm43_vm8, %v42_v39   ;;  %v48_v40 = vpop.permute.xlu0 %47   ;;  %vm149_vm8 = vcmask 449888  }
  0x7f   :  { %51 = vst.msk [vmem:[#allocation0 + $0x1] sm:$0x1] %vm49_vm9, %v48_v40   ;;  %vm155_vm9 = vcmask 425288  }
  0x80   :  { %57 = vst.msk [vmem:[#allocation0] sm:$0x1] %vm56_vm10, %v55_v41   ;;  %v68_v43 = vpop.permute.xlu1 %67   ;;  %vm162_vm10 = vcmask 392488  }
  0x81   :  { %70 = vst.msk [vmem:[#allocation0] sm:$0x1] %vm69_vm12, %v68_v43   ;;  %vm175_vm12 = vcmask 335088  }
  0x82   :  { %v61_v42 = vpop.permute.xlu0 %60  }
  0x83   :  { %64 = vst.msk [vmem:[#allocation0 + $0x1] sm:$0x1] %vm62_vm11, %v61_v42   ;;  %vm169_vm11 = vcmask 359688  }
  0x84   :  { %v81_v45 = vpop.permute.xlu1 %80  }
  0x85   :  { %84 = vst.msk [vmem:[#allocation0 + $0x1] sm:$0x1] %vm82_vm14, %v81_v45   ;;  %vm189_vm14 = vcmask 269488  }
  0x86   :  { %v74_v44 = vpop.permute.xlu0 %73  }
  0x87   :  { %77 = vst.msk [vmem:[#allocation0 + $0x2] sm:$0x1] %vm75_vm13, %v74_v44   ;;  %vm182_vm13 = vcmask 302288  }
  0x88   :  { %v94_v47 = vpop.permute.xlu1 %93  }
  0x89   :  { %97 = vst.msk [vmem:[#allocation0 + $0x2] sm:$0x1] %vm95_vm0, %v94_v47   ;;  %vm202_vm0 = vcmask 212088  }
  0x8a   :  { %v88_v46 = vpop.permute.xlu0 %87  }
  0x8b   :  { %90 = vst.msk [vmem:[#allocation0] sm:$0x1] %vm89_vm15, %v88_v46   ;;  %vm195_vm15 = vcmask 244888  }
  0x8c   :  { %v108_v49 = vpop.permute.xlu1 %107  }
  0x8d   :  { %110 = vst.msk [vmem:[#allocation0] sm:$0x1] %vm109_vm2, %v108_v49   ;;  %vm215_vm2 = vcmask 154688  }
  0x8e   :  { %v101_v48 = vpop.permute.xlu0 %100  }
  0x8f   :  { %104 = vst.msk [vmem:[#allocation0 + $0x1] sm:$0x1] %vm102_vm1, %v101_v48   ;;  %vm209_vm1 = vcmask 179288  }
  0x90   :  { %v121_v51 = vpop.permute.xlu1 %120  }
  0x91   :  { %124 = vst.msk [vmem:[#allocation0 + $0x1] sm:$0x1] %vm122_vm4, %v121_v51  }
  0x92   :  { %v114_v50 = vpop.permute.xlu0 %113  }
  0x93   :  { %117 = vst.msk [vmem:[#allocation0 + $0x2] sm:$0x1] %vm115_vm3, %v114_v50   ;;  %vm222_vm3 = vcmask 121888  }
  0x94   :  { %v134_v53 = vpop.permute.xlu1 %133  }
  0x95   :  { %137 = vst.msk [vmem:[#allocation0 + $0x2] sm:$0x1] %vm135_vm6, %v134_v53  }
  0x96   :  { %v128_v52 = vpop.permute.xlu0 %127  }
  0x97   :  { %130 = vst.msk [vmem:[#allocation0] sm:$0x1] %vm129_vm5, %v128_v52  }
  0x98   :  { %v148_v55 = vpop.permute.xlu1 %147  }
  0x99   :  { %150 = vst.msk [vmem:[#allocation0] sm:$0x1] %vm149_vm8, %v148_v55  }
  0x9a   :  { %v141_v54 = vpop.permute.xlu0 %140  }
  0x9b   :  { %144 = vst.msk [vmem:[#allocation0 + $0x1] sm:$0x1] %vm142_vm7, %v141_v54  }
  0x9c   :  { %v161_v57 = vpop.permute.xlu1 %160  }
  0x9d   :  { %164 = vst.msk [vmem:[#allocation0 + $0x1] sm:$0x1] %vm162_vm10, %v161_v57  }
  0x9e   :  { %v154_v56 = vpop.permute.xlu0 %153  }
  0x9f   :  { %157 = vst.msk [vmem:[#allocation0 + $0x2] sm:$0x1] %vm155_vm9, %v154_v56  }
  0xa0   :  { %v174_v59 = vpop.permute.xlu1 %173  }
  0xa1   :  { %177 = vst.msk [vmem:[#allocation0 + $0x2] sm:$0x1] %vm175_vm12, %v174_v59  }
  0xa2   :  { %v168_v58 = vpop.permute.xlu0 %167  }
  0xa3   :  { %170 = vst.msk [vmem:[#allocation0] sm:$0x1] %vm169_vm11, %v168_v58  }
  0xa4   :  { %v188_v61 = vpop.permute.xlu1 %187  }
  0xa5   :  { %190 = vst.msk [vmem:[#allocation0] sm:$0x1] %vm189_vm14, %v188_v61  }
  0xa6   :  { %v181_v60 = vpop.permute.xlu0 %180  }
  0xa7   :  { %184 = vst.msk [vmem:[#allocation0 + $0x1] sm:$0x1] %vm182_vm13, %v181_v60  }
  0xa8   :  { %v201_v63 = vpop.permute.xlu1 %200  }
  0xa9   :  { %204 = vst.msk [vmem:[#allocation0 + $0x1] sm:$0x1] %vm202_vm0, %v201_v63  }
  0xaa   :  { %v194_v62 = vpop.permute.xlu0 %193  }
  0xab   :  { %197 = vst.msk [vmem:[#allocation0 + $0x2] sm:$0x1] %vm195_vm15, %v194_v62  }
  0xac   :  { %v214_v1 = vpop.permute.xlu1 %213  }
  0xad   :  { %217 = vst.msk [vmem:[#allocation0 + $0x2] sm:$0x1] %vm215_vm2, %v214_v1  }
  0xae   :  { %v208_v0 = vpop.permute.xlu0 %207  }
  0xaf   :  { %210 = vst.msk [vmem:[#allocation0] sm:$0x1] %vm209_vm1, %v208_v0  }
  0xb2   :  { %v221_v2 = vpop.permute.xlu0 %220  }
  0xb3   :  { %224 = vst.msk [vmem:[#allocation0 + $0x1] sm:$0x1] %vm222_vm3, %v221_v2  }
  0xba   :  { %v228_v3 = vld [vmem:[#allocation0] sm:$0xf] }
  0xbb   :  { %230 = vst [vmem:[%s442_s1] sm:$0xf] %v228_v3 }

// kernel: field_batch_norm.1
= control target key start
LH: loop header
LB: loop body
LE: loop exit
PB: predicated region body
PF: predicated region fallthrough
CT: control target
= control target key end

     0   :  { %10 = vsyncpa [#allocation3], 0  ;;  %s1626_s0 = inlined_call_operand.hbm [shape: f32[1,352], index: 0, kind: input, shape index: {}]   ;;  %s1627_s1 = inlined_call_operand.hbm [shape: f32[1,352], index: 1, kind: input, shape index: {}]   ;;  %s1628_s2 = inlined_call_operand.hbm [shape: f32[1,352], index: 2, kind: input, shape index: {}]   ;;  %s1629_s3 = inlined_call_operand.hbm [shape: f32[1,352], index: 3, kind: input, shape index: {}]   ;;  %s1630_s4 = inlined_call_operand.hbm [shape: f32[11,352], index: 4, kind: input, shape index: {}]   ;;  %s1631_s5 = inlined_call_operand.hbm [shape: f32[1,352], index: 5, kind: output, shape index: {}]  }
   0x1   :  { %11 = vsyncpa [#allocation6], 0 }
   0x2   :  { %12 = vsyncpa [#allocation9], 0 }
   0x3   :  { %13 = vsyncpa [#allocation4], 0  ;;  %s1225_s18 = smov [#allocation5]   ;;  %s1226_s20 = smov [#allocation8]  }
   0x4   :  { %s30_s19 = sshll.u32 %s1225_s18, 4  ;;  %s50_s21 = sshll.u32 %s1226_s20, 4  ;;  %s31_s19 = int_to_ptr.vmem [resolvable:$true] %s30_s19  ;;  %s51_s21 = int_to_ptr.vmem [resolvable:$true] %s50_s21 }
   0x5   :  { %s1085_s24 = scalar_lea.hbm %s1627_s1, 48 }
   0x6   :  { %p1086_p0 = scmp.ne.s32.totalorder %s1627_s1, %s1085_s24  ;;  %p1089_p1 = scmp.lt.u32.totalorder %s1085_s24, %s1627_s1 }
   0x8   :  { %p1091_p2 = pnand %p1089_p1, %p1086_p0 }
   0xa   :  { %1094 = shalt.err (!%p1091_p2)
}
   0xb   :  { %s1095_s29 = scalar_lea.vmem %s31_s19, 48  ;;  %s1099_s30 = scalar_lea.vmem %s31_s19, 64 }
   0xc   :  { %p1096_p3 = scmp.ne.s32.totalorder %s31_s19, %s1095_s29  ;;  %p1100_p4 = scmp.lt.s32.totalorder %s31_s19, %s31_s19 }
   0xd   :  { %p1101_p5 = scmp.lt.s32.totalorder %s1099_s30, %s1095_s29 }
   0xf   :  { %p1102_p6 = por %p1101_p5, %p1100_p4 }
  0x11   :  { %p1103_p7 = pnand %p1102_p6, %p1096_p3 }
  0x13   :  { %1106 = shalt.err (!%p1103_p7)
}
  0x14   :  { %33 = dma.hbm_to_vmem [thread:$0]  %s1627_s1, 48, %s31_s19, [#allocation6]  }
  0x15   :  { %s1107_s10 = scalar_lea.hbm %s1629_s3, 48 }
  0x16   :  { %p1108_p8 = scmp.ne.s32.totalorder %s1629_s3, %s1107_s10  ;;  %p1111_p9 = scmp.lt.u32.totalorder %s1107_s10, %s1629_s3 }
  0x18   :  { %p1113_p10 = pnand %p1111_p9, %p1108_p8 }
  0x1a   :  { %1116 = shalt.err (!%p1113_p10)
}
  0x1b   :  { %s1117_s15 = scalar_lea.vmem %s51_s21, 48  ;;  %s1121_s16 = scalar_lea.vmem %s51_s21, 64 }
  0x1c   :  { %p1118_p11 = scmp.ne.s32.totalorder %s51_s21, %s1117_s15  ;;  %p1122_p12 = scmp.lt.s32.totalorder %s51_s21, %s51_s21 }
  0x1d   :  { %p1123_p13 = scmp.lt.s32.totalorder %s1121_s16, %s1117_s15 }
  0x1f   :  { %p1124_p0 = por %p1123_p13, %p1122_p12 }
  0x21   :  { %p1125_p1 = pnand %p1124_p0, %p1118_p11 }
  0x23   :  { %1128 = shalt.err (!%p1125_p1)
}
  0x24   :  { %53 = dma.hbm_to_vmem [thread:$0]  %s1629_s3, 48, %s51_s21, [#allocation9]  }
  0x25   :  { %s1227_s18 = smov [#allocation2]   ;;  %s1228_s20 = smov [#allocation7]  }
  0x26   :  { %s20_s19 = sshll.u32 %s1227_s18, 4  ;;  %s40_s22 = sshll.u32 %s1228_s20, 4  ;;  %s21_s19 = int_to_ptr.vmem [resolvable:$true] %s20_s19  ;;  %s41_s22 = int_to_ptr.vmem [resolvable:$true] %s40_s22 }
  0x27   :  { %s1129_s25 = scalar_lea.hbm %s1626_s0, 48 }
  0x28   :  { %p1130_p2 = scmp.ne.s32.totalorder %s1626_s0, %s1129_s25  ;;  %p1133_p3 = scmp.lt.u32.totalorder %s1129_s25, %s1626_s0 }
  0x2a   :  { %p1135_p4 = pnand %p1133_p3, %p1130_p2 }
  0x2c   :  { %1138 = shalt.err (!%p1135_p4)
}
  0x2d   :  { %s1139_s3 = scalar_lea.vmem %s21_s19, 48  ;;  %s1143_s21 = scalar_lea.vmem %s21_s19, 64 }
  0x2e   :  { %p1140_p5 = scmp.ne.s32.totalorder %s21_s19, %s1139_s3  ;;  %p1144_p6 = scmp.lt.s32.totalorder %s21_s19, %s21_s19 }
  0x2f   :  { %p1145_p7 = scmp.lt.s32.totalorder %s1143_s21, %s1139_s3 }
  0x31   :  { %p1146_p8 = por %p1145_p7, %p1144_p6 }
  0x33   :  { %p1147_p9 = pnand %p1146_p8, %p1140_p5 }
  0x35   :  { %1150 = shalt.err (!%p1147_p9)
}
  0x36   :  { %23 = dma.hbm_to_vmem [thread:$0]  %s1626_s0, 48, %s21_s19, [#allocation3]  }
  0x37   :  { %s1151_s9 = scalar_lea.hbm %s1628_s2, 48 }
  0x38   :  { %p1152_p10 = scmp.ne.s32.totalorder %s1628_s2, %s1151_s9  ;;  %p1155_p11 = scmp.lt.u32.totalorder %s1151_s9, %s1628_s2 }
  0x3a   :  { %p1157_p12 = pnand %p1155_p11, %p1152_p10 }
  0x3c   :  { %1160 = shalt.err (!%p1157_p12)
}
  0x3d   :  { %s1161_s14 = scalar_lea.vmem %s41_s22, 48  ;;  %s1165_s15 = scalar_lea.vmem %s41_s22, 64 }
  0x3e   :  { %p1162_p13 = scmp.ne.s32.totalorder %s41_s22, %s1161_s14  ;;  %p1166_p0 = scmp.lt.s32.totalorder %s41_s22, %s41_s22 }
  0x3f   :  { %p1167_p1 = scmp.lt.s32.totalorder %s1165_s15, %s1161_s14 }
  0x41   :  { %p1168_p2 = por %p1167_p1, %p1166_p0 }
  0x43   :  { %p1169_p3 = pnand %p1168_p2, %p1162_p13 }
  0x45   :  { %1172 = shalt.err (!%p1169_p3)
}
  0x46   :  { %43 = dma.hbm_to_vmem [thread:$0]  %s1628_s2, 48, %s41_s22, [#allocation6]  }
  0x47   :  { %s1229_s1 = smov [#allocation10]   ;;  %s1173_s20 = scalar_lea.hbm %s1630_s4, 768 }
  0x48   :  { %s59_s17 = sshll.u32 %s1229_s1, 4  ;;  %p1174_p4 = scmp.ne.s32.totalorder %s1630_s4, %s1173_s20  ;;  %s60_s17 = int_to_ptr.vmem [resolvable:$true] %s59_s17 }
  0x49   :  { %p1177_p5 = scmp.lt.u32.totalorder %s1173_s20, %s1630_s4 }
  0x4b   :  { %p1179_p6 = pnand %p1177_p5, %p1174_p4 }
  0x4d   :  { %1182 = shalt.err (!%p1179_p6)
}
  0x4e   :  { %s1183_s27 = scalar_lea.vmem %s60_s17, 768  ;;  %p1188_p8 = scmp.lt.s32.totalorder %s60_s17, %s60_s17 }
  0x4f   :  { %p1184_p7 = scmp.ne.s32.totalorder %s60_s17, %s1183_s27  ;;  %p1189_p9 = scmp.lt.s32.totalorder %s1183_s27, %s1183_s27 }
  0x51   :  { %p1190_p10 = por %p1189_p9, %p1188_p8 }
  0x53   :  { %p1191_p11 = pnand %p1190_p10, %p1184_p7 }
  0x55   :  { %1194 = shalt.err (!%p1191_p11)
}
  0x56   :  { %s1230_s2 = smov 384   ;;  %s1231_s22 = smov 24  }
  0x57   :  { %65 = dma.hbm_to_vmem [thread:$0]  %s1630_s4, 768, %s60_s17, [#allocation9], %s1230_s2, %s1230_s2, %s1231_s22  }
  0x58   :  { %1217 = dma.done.wait [#allocation3], 48  }
  0x59   :  { %1218 = vsyncadd [#allocation3], 4294967248 }
  0x5a   :  { %1219 = dma.done.wait [#allocation6], 96  }
  0x5b   :  { %1220 = vsyncadd [#allocation6], 4294967200 }
  0x5c   :  { %1221 = dma.done.wait [#allocation9], 816  }
  0x5d   :  { %1222 = vsyncadd [#allocation9], 4294966480  ;;  %v88_v0 = vlaneseq  ;;  %v1336_v5 = vld [vmem:[#allocation2] sm:$0x7]  ;;  %vm103_vm0 = vcmask 1040384   ;;  %vm107_vm1 = vcmask 778240  }
  0x5e   :  { %v1338_v6 = vld [vmem:[#allocation10] ss:$8 sm:$0x7]  ;;  %v1344_v8 = vmul.f32 %v1336_v5, %v1336_v5  ;;  %v1346_v9 = vld [vmem:[#allocation10 + $0x1] ss:$8 sm:$0x7] }
  0x5f   :  { %v1325_v1 = vshrl.u32 %v88_v0, 7  ;;  %v86_v7 = vmul.f32 %v1338_v6, %v1336_v5  ;;  %v1348_v10 = vld [vmem:[#allocation10 + $0x2] ss:$8 sm:$0x7]  ;;  %v166_v11 = vmul.f32 %v1346_v9, %v1336_v5  ;;  %s1233_s4 = smov [#allocation11]   ;;  %vm1050_vm3 = vcmp.lt.s32.totalorder %v88_v0, 352 }
  0x60   :  { %v244_v12 = vmul.f32 %v1348_v10, %v1336_v5  ;;  %v112_v16 = vmul.f32 %v1338_v6, %v1344_v8  ;;  %v190_v20 = vmul.f32 %v1346_v9, %v1344_v8  ;;  %v1383_v45 = vld [vmem:[#allocation10 + $0x3] ss:$8 sm:$0x7]  ;;  %v268_v49 = vmul.f32 %v1348_v10, %v1344_v8  ;;  %v1389_v50 = vld [vmem:[#allocation10 + $0x4] ss:$8 sm:$0x7] }
  0x61   :  { %v1328_v2 = vsub.s32 0, %v1325_v1  ;;  %v1331_v3 = vsub.s32 1, %v1325_v1  ;;  %v1334_v4 = vsub.s32 2, %v1325_v1  ;;  %v322_v60 = vmul.f32 %v1383_v45, %v1336_v5  ;;  %s1059_s3 = sshll.u32 %s1233_s4, 4  ;;  %s1060_s3 = int_to_ptr.vmem [resolvable:$true] %s1059_s3 }
  0x62   :  { %v346_v61 = vmul.f32 %v1383_v45, %v1344_v8  ;;  %v400_v62 = vmul.f32 %v1389_v50, %v1336_v5  ;;  %s1195_s21 = scalar_lea.vmem %s1060_s3, 48  ;;  %s1199_s30 = scalar_lea.vmem %s1060_s3, 64 }
  0x63   :  { %v91_v13 = vrot.slane %v86_v7, %v1328_v2  ;;  %v95_v14 = vrot.slane %v86_v7, %v1331_v3  ;;  %v99_v15 = vrot.slane %v86_v7, %v1334_v4  ;;  %v171_v17 = vrot.slane %v166_v11, %v1328_v2  ;;  %p1196_p12 = scmp.ne.s32.totalorder %s1060_s3, %s1195_s21  ;;  %p1200_p13 = scmp.lt.s32.totalorder %s1060_s3, %s1060_s3 }
  0x64   :  { %v175_v18 = vrot.slane %v166_v11, %v1331_v3  ;;  %v179_v19 = vrot.slane %v166_v11, %v1334_v4  ;;  %v117_v24 = vrot.slane %v112_v16, %v1328_v2  ;;  %v121_v26 = vrot.slane %v112_v16, %v1331_v3  ;;  %p1201_p0 = scmp.lt.s32.totalorder %s1199_s30, %s1195_s21 }
  0x65   :  { %v104_v21 = vsel %vm103_vm0, %v91_v13, 0.0  ;;  %v105_v22 = vsel %vm103_vm0, %v95_v14, 0.0  ;;  %v108_v23 = vsel %vm107_vm1, %v99_v15, 0.0  ;;  %v125_v27 = vrot.slane %v112_v16, %v1334_v4 }
  0x66   :  { %v106_v25 = vadd.f32 %v105_v22, %v104_v21  ;;  %v183_v28 = vsel %vm103_vm0, %v171_v17, 0.0  ;;  %v129_v29 = vsel %vm103_vm0, %v117_v24, 0.0  ;;  %v184_v30 = vsel %vm103_vm0, %v175_v18, 0.0  ;;  %p1202_p1 = por %p1201_p0, %p1200_p13 }
  0x67   :  { %v186_v31 = vsel %vm107_vm1, %v179_v19, 0.0  ;;  %v195_v32 = vrot.slane %v190_v20, %v1328_v2  ;;  %v130_v34 = vsel %vm103_vm0, %v121_v26, 0.0  ;;  %v132_v35 = vsel %vm107_vm1, %v125_v27, 0.0 }
  0x68   :  { %v109_v33 = vadd.f32 %v108_v23, %v106_v25  ;;  %v185_v36 = vadd.f32 %v184_v30, %v183_v28  ;;  %v131_v37 = vadd.f32 %v130_v34, %v129_v29  ;;  %v199_v38 = vrot.slane %v190_v20, %v1331_v3  ;;  %v1416_v25 = vld [vmem:[#allocation10 + $0x5] ss:$8 sm:$0x7]  ;;  %v1421_v30 = vld [vmem:[#allocation10 + $0x6] ss:$8 sm:$0x7]  ;;  %p1203_p2 = pnand %p1202_p1, %p1196_p12 }
  0x69   :  { %v203_v39 = vrot.slane %v190_v20, %v1334_v4  ;;  %v207_v40 = vsel %vm103_vm0, %v195_v32, 0.0  ;;  %v249_v42 = vrot.slane %v244_v12, %v1328_v2  ;;  %v253_v43 = vrot.slane %v244_v12, %v1331_v3 }
  0x6a   :  { %110 = vadd.xlane.f32.xlu0 %v109_v33  ;;  %v187_v41 = vadd.f32 %v186_v31, %v185_v36  ;;  %v257_v44 = vrot.slane %v244_v12, %v1334_v4  ;;  %v133_v46 = vadd.f32 %v132_v35, %v131_v37  ;;  %v208_v47 = vsel %vm103_vm0, %v199_v38, 0.0 }
  0x6b   :  { %v210_v48 = vsel %vm107_vm1, %v203_v39, 0.0  ;;  %v209_v51 = vadd.f32 %v208_v47, %v207_v40  ;;  %v261_v52 = vsel %vm103_vm0, %v249_v42, 0.0  ;;  %v262_v53 = vsel %vm103_vm0, %v253_v43, 0.0 }
  0x6c   :  { %v264_v54 = vsel %vm107_vm1, %v257_v44, 0.0  ;;  %134 = vadd.xlane.f32.xlu1 %v133_v46  ;;  %v263_v55 = vadd.f32 %v262_v53, %v261_v52  ;;  %v273_v56 = vrot.slane %v268_v49, %v1328_v2  ;;  %v277_v57 = vrot.slane %v268_v49, %v1331_v3 }
  0x6d   :  { %v281_v58 = vrot.slane %v268_v49, %v1334_v4  ;;  %v211_v59 = vadd.f32 %v210_v48, %v209_v51  ;;  %v327_v14 = vrot.slane %v322_v60, %v1328_v2  ;;  %v331_v15 = vrot.slane %v322_v60, %v1331_v3 }
  0x6e   :  { %188 = vadd.xlane.f32.xlu0 %v187_v41  ;;  %v265_v63 = vadd.f32 %v264_v54, %v263_v55  ;;  %v285_v7 = vsel %vm103_vm0, %v273_v56, 0.0  ;;  %v286_v11 = vsel %vm103_vm0, %v277_v57, 0.0  ;;  %v335_v16 = vrot.slane %v322_v60, %v1334_v4 }
  0x6f   :  { %v288_v12 = vsel %vm107_vm1, %v281_v58, 0.0  ;;  %v287_v13 = vadd.f32 %v286_v11, %v285_v7  ;;  %v351_v17 = vrot.slane %v346_v61, %v1328_v2  ;;  %v355_v18 = vrot.slane %v346_v61, %v1331_v3 }
  0x70   :  { %212 = vadd.xlane.f32.xlu1 %v211_v59  ;;  %v359_v19 = vrot.slane %v346_v61, %v1334_v4  ;;  %v405_v20 = vrot.slane %v400_v62, %v1328_v2  ;;  %v339_v22 = vsel %vm103_vm0, %v327_v14, 0.0  ;;  %v340_v23 = vsel %vm103_vm0, %v331_v15, 0.0  ;;  %v1455_v15 = vld [vmem:[#allocation10 + $0x7] ss:$8 sm:$0x7] }
  0x71   :  { %v289_v21 = vadd.f32 %v288_v12, %v287_v13  ;;  %v342_v24 = vsel %vm107_vm1, %v335_v16, 0.0  ;;  %v341_v26 = vadd.f32 %v340_v23, %v339_v22  ;;  %v363_v27 = vsel %vm103_vm0, %v351_v17, 0.0 }
  0x72   :  { %266 = vadd.xlane.f32.xlu0 %v265_v63  ;;  %v364_v28 = vsel %vm103_vm0, %v355_v18, 0.0  ;;  %v366_v29 = vsel %vm107_vm1, %v359_v19, 0.0  ;;  %v409_v32 = vrot.slane %v400_v62, %v1331_v3  ;;  %v413_v33 = vrot.slane %v400_v62, %v1334_v4 }
  0x73   :  { %v365_v31 = vadd.f32 %v364_v28, %v363_v27  ;;  %v417_v34 = vsel %vm103_vm0, %v405_v20, 0.0  ;;  %v343_v35 = vadd.f32 %v342_v24, %v341_v26  ;;  %v424_v36 = vmul.f32 %v1389_v50, %v1344_v8  ;;  %v1461_v20 = vld [vmem:[#allocation10 + $0x18] ss:$8 sm:$0x7] }
  0x74   :  { %290 = vadd.xlane.f32.xlu1 %v289_v21  ;;  %v478_v37 = vmul.f32 %v1416_v25, %v1336_v5  ;;  %v502_v38 = vmul.f32 %v1416_v25, %v1344_v8  ;;  %v418_v40 = vsel %vm103_vm0, %v409_v32, 0.0  ;;  %v420_v41 = vsel %vm107_vm1, %v413_v33, 0.0 }
  0x75   :  { %v367_v39 = vadd.f32 %v366_v29, %v365_v31  ;;  %v556_v42 = vmul.f32 %v1421_v30, %v1336_v5  ;;  %v419_v43 = vadd.f32 %v418_v40, %v417_v34  ;;  %v429_v44 = vrot.slane %v424_v36, %v1328_v2 }
  0x76   :  { %344 = vadd.xlane.f32.xlu0 %v343_v35  ;;  %v433_v46 = vrot.slane %v424_v36, %v1331_v3  ;;  %v437_v47 = vrot.slane %v424_v36, %v1334_v4  ;;  %v483_v48 = vrot.slane %v478_v37, %v1328_v2  ;;  %v487_v49 = vrot.slane %v478_v37, %v1331_v3 }
  0x77   :  { %v491_v51 = vrot.slane %v478_v37, %v1334_v4  ;;  %v507_v52 = vrot.slane %v502_v38, %v1328_v2  ;;  %v421_v53 = vadd.f32 %v420_v41, %v419_v43  ;;  %v441_v54 = vsel %vm103_vm0, %v429_v44, 0.0 }
  0x78   :  { %368 = vadd.xlane.f32.xlu1 %v367_v39  ;;  %v442_v55 = vsel %vm103_vm0, %v433_v46, 0.0  ;;  %v444_v56 = vsel %vm107_vm1, %v437_v47, 0.0  ;;  %v495_v58 = vsel %vm103_vm0, %v483_v48, 0.0  ;;  %v496_v59 = vsel %vm103_vm0, %v487_v49, 0.0 }
  0x79   :  { %v443_v57 = vadd.f32 %v442_v55, %v441_v54  ;;  %v498_v60 = vsel %vm107_vm1, %v491_v51, 0.0  ;;  %v497_v61 = vadd.f32 %v496_v59, %v495_v58  ;;  %v511_v62 = vrot.slane %v502_v38, %v1331_v3  ;;  %v1493_v58 = vld [vmem:[#allocation10 + $0x1a] ss:$8 sm:$0x7] }
  0x7a   :  { %422 = vadd.xlane.f32.xlu0 %v421_v53  ;;  %v515_v63 = vrot.slane %v502_v38, %v1334_v4  ;;  %v519_v7 = vsel %vm103_vm0, %v507_v52, 0.0  ;;  %v561_v12 = vrot.slane %v556_v42, %v1328_v2  ;;  %v565_v13 = vrot.slane %v556_v42, %v1331_v3  ;;  %v1488_v53 = vld [vmem:[#allocation10 + $0x19] ss:$8 sm:$0x7] }
  0x7b   :  { %v445_v11 = vadd.f32 %v444_v56, %v443_v57  ;;  %v569_v14 = vrot.slane %v556_v42, %v1334_v4  ;;  %v499_v16 = vadd.f32 %v498_v60, %v497_v61  ;;  %v520_v17 = vsel %vm103_vm0, %v511_v62, 0.0 }
  0x7c   :  { %v522_v18 = vsel %vm107_vm1, %v515_v63, 0.0  ;;  %v580_v19 = vmul.f32 %v1421_v30, %v1344_v8  ;;  %v521_v21 = vadd.f32 %v520_v17, %v519_v7  ;;  %v573_v22 = vsel %vm103_vm0, %v561_v12, 0.0 }
  0x7d   :  { %446 = vadd.xlane.f32.xlu1 %v445_v11  ;;  %v574_v23 = vsel %vm103_vm0, %v565_v13, 0.0  ;;  %v576_v24 = vsel %vm107_vm1, %v569_v14, 0.0  ;;  %v634_v32 = vmul.f32 %v1455_v15, %v1336_v5  ;;  %v658_v33 = vmul.f32 %v1455_v15, %v1344_v8 }
  0x7e   :  { %500 = vadd.xlane.f32.xlu0 %v499_v16  ;;  %v575_v26 = vadd.f32 %v574_v23, %v573_v22  ;;  %v585_v27 = vrot.slane %v580_v19, %v1328_v2  ;;  %v589_v28 = vrot.slane %v580_v19, %v1331_v3  ;;  %v593_v29 = vrot.slane %v580_v19, %v1334_v4 }
  0x7f   :  { %v523_v31 = vadd.f32 %v522_v18, %v521_v21  ;;  %v712_v34 = vmul.f32 %v1461_v20, %v1336_v5  ;;  %v639_v40 = vrot.slane %v634_v32, %v1328_v2  ;;  %v643_v41 = vrot.slane %v634_v32, %v1331_v3 }
  0x80   :  { %v577_v35 = vadd.f32 %v576_v24, %v575_v26  ;;  %v597_v36 = vsel %vm103_vm0, %v585_v27, 0.0  ;;  %v598_v37 = vsel %vm103_vm0, %v589_v28, 0.0  ;;  %v600_v38 = vsel %vm107_vm1, %v593_v29, 0.0 }
  0x81   :  { %524 = vadd.xlane.f32.xlu1 %v523_v31  ;;  %v599_v39 = vadd.f32 %v598_v37, %v597_v36  ;;  %v647_v42 = vrot.slane %v634_v32, %v1334_v4  ;;  %v663_v43 = vrot.slane %v658_v33, %v1328_v2  ;;  %v667_v44 = vrot.slane %v658_v33, %v1331_v3 }
  0x82   :  { %578 = vadd.xlane.f32.xlu0 %v577_v35  ;;  %v671_v46 = vrot.slane %v658_v33, %v1334_v4  ;;  %v717_v47 = vrot.slane %v712_v34, %v1328_v2  ;;  %v651_v49 = vsel %vm103_vm0, %v639_v40, 0.0  ;;  %v652_v51 = vsel %vm103_vm0, %v643_v41, 0.0 }
  0x83   :  { %v601_v48 = vadd.f32 %v600_v38, %v599_v39  ;;  %v654_v52 = vsel %vm107_vm1, %v647_v42, 0.0  ;;  %v653_v54 = vadd.f32 %v652_v51, %v651_v49  ;;  %v675_v55 = vsel %vm103_vm0, %v663_v43, 0.0 }
  0x84   :  { %v676_v56 = vsel %vm103_vm0, %v667_v44, 0.0  ;;  %v678_v57 = vsel %vm107_vm1, %v671_v46, 0.0  ;;  %v721_v60 = vrot.slane %v712_v34, %v1331_v3  ;;  %v725_v61 = vrot.slane %v712_v34, %v1334_v4 }
  0x85   :  { %602 = vadd.xlane.f32.xlu1 %v601_v48  ;;  %v677_v59 = vadd.f32 %v676_v56, %v675_v55  ;;  %v729_v62 = vsel %vm103_vm0, %v717_v47, 0.0  ;;  %v655_v63 = vadd.f32 %v654_v52, %v653_v54  ;;  %v736_v7 = vmul.f32 %v1461_v20, %v1344_v8 }
  0x86   :  { %v790_v11 = vmul.f32 %v1488_v53, %v1336_v5  ;;  %v814_v12 = vmul.f32 %v1488_v53, %v1344_v8  ;;  %v730_v14 = vsel %vm103_vm0, %v721_v60, 0.0  ;;  %v732_v16 = vsel %vm107_vm1, %v725_v61, 0.0 }
  0x87   :  { %v679_v13 = vadd.f32 %v678_v57, %v677_v59  ;;  %v868_v17 = vmul.f32 %v1493_v58, %v1336_v5  ;;  %656 = vadd.xlane.f32.xlu0 %v655_v63  ;;  %v731_v18 = vadd.f32 %v730_v14, %v729_v62  ;;  %v741_v19 = vrot.slane %v736_v7, %v1328_v2 }
  0x88   :  { %v745_v21 = vrot.slane %v736_v7, %v1331_v3  ;;  %v749_v22 = vrot.slane %v736_v7, %v1334_v4  ;;  %v795_v23 = vrot.slane %v790_v11, %v1328_v2  ;;  %v799_v24 = vrot.slane %v790_v11, %v1331_v3 }
  0x89   :  { %680 = vadd.xlane.f32.xlu1 %v679_v13  ;;  %v803_v26 = vrot.slane %v790_v11, %v1334_v4  ;;  %v819_v27 = vrot.slane %v814_v12, %v1328_v2  ;;  %v733_v28 = vadd.f32 %v732_v16, %v731_v18  ;;  %v753_v29 = vsel %vm103_vm0, %v741_v19, 0.0 }
  0x8a   :  { %v754_v31 = vsel %vm103_vm0, %v745_v21, 0.0  ;;  %v756_v32 = vsel %vm107_vm1, %v749_v22, 0.0  ;;  %v807_v34 = vsel %vm103_vm0, %v795_v23, 0.0  ;;  %v808_v35 = vsel %vm103_vm0, %v799_v24, 0.0 }
  0x8b   :  { %v755_v33 = vadd.f32 %v754_v31, %v753_v29  ;;  %v810_v36 = vsel %vm107_vm1, %v803_v26, 0.0  ;;  %734 = vadd.xlane.f32.xlu0 %v733_v28  ;;  %v809_v37 = vadd.f32 %v808_v35, %v807_v34  ;;  %v823_v38 = vrot.slane %v814_v12, %v1331_v3 }
  0x8c   :  { %v827_v39 = vrot.slane %v814_v12, %v1334_v4  ;;  %v831_v40 = vsel %vm103_vm0, %v819_v27, 0.0  ;;  %v873_v42 = vrot.slane %v868_v17, %v1328_v2  ;;  %v877_v43 = vrot.slane %v868_v17, %v1331_v3 }
  0x8d   :  { %v757_v41 = vadd.f32 %v756_v32, %v755_v33  ;;  %v881_v44 = vrot.slane %v868_v17, %v1334_v4  ;;  %v811_v46 = vadd.f32 %v810_v36, %v809_v37  ;;  %v832_v47 = vsel %vm103_vm0, %v823_v38, 0.0 }
  0x8e   :  { %v834_v48 = vsel %vm107_vm1, %v827_v39, 0.0  ;;  %v892_v49 = vmul.f32 %v1493_v58, %v1344_v8  ;;  %v833_v51 = vadd.f32 %v832_v47, %v831_v40  ;;  %v885_v52 = vsel %vm103_vm0, %v873_v42, 0.0 }
  0x8f   :  { %758 = vadd.xlane.f32.xlu1 %v757_v41  ;;  %v886_v54 = vsel %vm103_vm0, %v877_v43, 0.0  ;;  %v888_v55 = vsel %vm107_vm1, %v881_v44, 0.0  ;;  %812 = vadd.xlane.f32.xlu0 %v811_v46  ;;  %v140_v13 = vrot.slane %v1338_v6, %v1328_v2  ;;  %v144_v14 = vrot.slane %v1338_v6, %v1331_v3 }
  0x90   :  { %v887_v56 = vadd.f32 %v886_v54, %v885_v52  ;;  %v897_v57 = vrot.slane %v892_v49, %v1328_v2  ;;  %v901_v59 = vrot.slane %v892_v49, %v1331_v3  ;;  %v905_v60 = vrot.slane %v892_v49, %v1334_v4 }
  0x91   :  { %v835_v61 = vadd.f32 %v834_v48, %v833_v51  ;;  %v148_v17 = vrot.slane %v1338_v6, %v1334_v4  ;;  %v218_v18 = vrot.slane %v1346_v9, %v1328_v2  ;;  %v222_v19 = vrot.slane %v1346_v9, %v1331_v3 }
  0x92   :  { %v889_v62 = vadd.f32 %v888_v55, %v887_v56  ;;  %v909_v8 = vsel %vm103_vm0, %v897_v57, 0.0  ;;  %v910_v63 = vsel %vm103_vm0, %v901_v59, 0.0  ;;  %v912_v7 = vsel %vm107_vm1, %v905_v60, 0.0 }
  0x93   :  { %836 = vadd.xlane.f32.xlu1 %v835_v61  ;;  %v911_v11 = vadd.f32 %v910_v63, %v909_v8  ;;  %v226_v21 = vrot.slane %v1346_v9, %v1334_v4  ;;  %v296_v23 = vrot.slane %v1348_v10, %v1328_v2  ;;  %v300_v28 = vrot.slane %v1348_v10, %v1331_v3 }
  0x94   :  { %890 = vadd.xlane.f32.xlu0 %v889_v62  ;;  %v304_v6 = vrot.slane %v1348_v10, %v1334_v4  ;;  %v374_v10 = vrot.slane %v1383_v45, %v1328_v2  ;;  %v378_v52 = vrot.slane %v1383_v45, %v1331_v3  ;;  %v382_v59 = vrot.slane %v1383_v45, %v1334_v4 }
  0x95   :  { %v913_v12 = vadd.f32 %v912_v7, %v911_v11  ;;  %v452_v63 = vrot.slane %v1389_v50, %v1328_v2  ;;  %v456_v7 = vrot.slane %v1389_v50, %v1331_v3  ;;  %v460_v45 = vrot.slane %v1389_v50, %v1334_v4 }
  0x97   :  { %914 = vadd.xlane.f32.xlu1 %v913_v12 }
  0xf7   :  { %v111_v16 = vpop.xlane.xlu0 %110 }
  0xf8   :  { %v152_v24 = vmul.f32 %v140_v13, %v111_v16  ;;  %v153_v26 = vmul.f32 %v144_v14, %v111_v16  ;;  %v154_v29 = vmul.f32 %v148_v17, %v111_v16 }
  0xf9   :  { %v135_v22 = vpop.xlane.xlu1 %134 }
  0xfa   :  { %v158_v34 = vmul.f32 %v140_v13, %v135_v22  ;;  %v159_v35 = vmul.f32 %v144_v14, %v135_v22  ;;  %v160_v39 = vmul.f32 %v148_v17, %v135_v22 }
  0xfb   :  { %v189_v27 = vpop.xlane.xlu0 %188 }
  0xfc   :  { %v230_v31 = vmul.f32 %v218_v18, %v189_v27  ;;  %v231_v32 = vmul.f32 %v222_v19, %v189_v27  ;;  %v232_v33 = vmul.f32 %v226_v21, %v189_v27 }
  0xfd   :  { %v213_v38 = vpop.xlane.xlu1 %212 }
  0xfe   :  { %v233_v9 = vadd.f32 %v230_v31, %v152_v24  ;;  %v234_v36 = vadd.f32 %v231_v32, %v153_v26  ;;  %v235_v37 = vadd.f32 %v232_v33, %v154_v29  ;;  %v236_v40 = vmul.f32 %v218_v18, %v213_v38 }
  0xff   :  { %v237_v41 = vmul.f32 %v222_v19, %v213_v38  ;;  %v238_v42 = vmul.f32 %v226_v21, %v213_v38  ;;  %v267_v43 = vpop.xlane.xlu0 %266  ;;  %v530_v19 = vrot.slane %v1416_v25, %v1328_v2  ;;  %v538_v29 = vrot.slane %v1416_v25, %v1334_v4 }
 0x100   :  { %v308_v44 = vmul.f32 %v296_v23, %v267_v43  ;;  %v309_v46 = vmul.f32 %v300_v28, %v267_v43  ;;  %v310_v47 = vmul.f32 %v304_v6, %v267_v43  ;;  %v239_v48 = vadd.f32 %v236_v40, %v158_v34 }
 0x101   :  { %v240_v49 = vadd.f32 %v237_v41, %v159_v35  ;;  %v241_v51 = vadd.f32 %v238_v42, %v160_v39  ;;  %v291_v57 = vpop.xlane.xlu1 %290  ;;  %v612_v38 = vrot.slane %v1421_v30, %v1331_v3  ;;  %v616_v39 = vrot.slane %v1421_v30, %v1334_v4 }
 0x102   :  { %v311_v54 = vadd.f32 %v308_v44, %v233_v9  ;;  %v312_v55 = vadd.f32 %v309_v46, %v234_v36  ;;  %v313_v56 = vadd.f32 %v310_v47, %v235_v37  ;;  %v314_v60 = vmul.f32 %v296_v23, %v291_v57 }
 0x103   :  { %v315_v61 = vmul.f32 %v300_v28, %v291_v57  ;;  %v316_v62 = vmul.f32 %v304_v6, %v291_v57  ;;  %v345_v8 = vpop.xlane.xlu0 %344  ;;  %v534_v6 = vrot.slane %v1416_v25, %v1331_v3  ;;  %v608_v37 = vrot.slane %v1421_v30, %v1328_v2 }
 0x104   :  { %v317_v11 = vadd.f32 %v314_v60, %v239_v48  ;;  %v386_v14 = vmul.f32 %v374_v10, %v345_v8  ;;  %v387_v16 = vmul.f32 %v378_v52, %v345_v8  ;;  %v388_v17 = vmul.f32 %v382_v59, %v345_v8 }
 0x105   :  { %v318_v12 = vadd.f32 %v315_v61, %v240_v49  ;;  %v319_v13 = vadd.f32 %v316_v62, %v241_v51  ;;  %v369_v18 = vpop.xlane.xlu1 %368 }
 0x106   :  { %v389_v21 = vadd.f32 %v386_v14, %v311_v54  ;;  %v392_v22 = vmul.f32 %v374_v10, %v369_v18  ;;  %v393_v23 = vmul.f32 %v378_v52, %v369_v18  ;;  %v394_v24 = vmul.f32 %v382_v59, %v369_v18 }
 0x107   :  { %v390_v26 = vadd.f32 %v387_v16, %v312_v55  ;;  %v391_v27 = vadd.f32 %v388_v17, %v313_v56  ;;  %v423_v28 = vpop.xlane.xlu0 %422 }
 0x108   :  { %v395_v31 = vadd.f32 %v392_v22, %v317_v11  ;;  %v396_v32 = vadd.f32 %v393_v23, %v318_v12  ;;  %v397_v33 = vadd.f32 %v394_v24, %v319_v13  ;;  %v464_v50 = vmul.f32 %v452_v63, %v423_v28 }
 0x109   :  { %v465_v34 = vmul.f32 %v456_v7, %v423_v28  ;;  %v466_v35 = vmul.f32 %v460_v45, %v423_v28  ;;  %v690_v13 = vrot.slane %v1455_v15, %v1331_v3  ;;  %v764_v23 = vrot.slane %v1461_v20, %v1328_v2 }
 0x10a   :  { %v467_v9 = vadd.f32 %v464_v50, %v389_v21  ;;  %v447_v36 = vpop.xlane.xlu1 %446 }
 0x10b   :  { %v468_v40 = vadd.f32 %v465_v34, %v390_v26  ;;  %v469_v41 = vadd.f32 %v466_v35, %v391_v27  ;;  %v470_v25 = vmul.f32 %v452_v63, %v447_v36  ;;  %v471_v42 = vmul.f32 %v456_v7, %v447_v36  ;;  %v501_v43 = vpop.xlane.xlu0 %500 }
 0x10c   :  { %v472_v44 = vmul.f32 %v460_v45, %v447_v36  ;;  %v542_v46 = vmul.f32 %v530_v19, %v501_v43  ;;  %v543_v47 = vmul.f32 %v534_v6, %v501_v43  ;;  %v544_v10 = vmul.f32 %v538_v29, %v501_v43 }
 0x10d   :  { %v473_v48 = vadd.f32 %v470_v25, %v395_v31  ;;  %v474_v49 = vadd.f32 %v471_v42, %v396_v32  ;;  %v686_v63 = vrot.slane %v1455_v15, %v1328_v2  ;;  %v694_v45 = vrot.slane %v1455_v15, %v1334_v4 }
 0x10e   :  { %v475_v51 = vadd.f32 %v472_v44, %v397_v33  ;;  %v545_v52 = vadd.f32 %v542_v46, %v467_v9  ;;  %v546_v54 = vadd.f32 %v543_v47, %v468_v40  ;;  %v547_v55 = vadd.f32 %v544_v10, %v469_v41  ;;  %v525_v56 = vpop.xlane.xlu1 %524 }
 0x10f   :  { %v548_v57 = vmul.f32 %v530_v19, %v525_v56  ;;  %v549_v59 = vmul.f32 %v534_v6, %v525_v56  ;;  %v550_v60 = vmul.f32 %v538_v29, %v525_v56  ;;  %v579_v30 = vpop.xlane.xlu0 %578  ;;  %v768_v6 = vrot.slane %v1461_v20, %v1331_v3 }
 0x110   :  { %v620_v61 = vmul.f32 %v608_v37, %v579_v30  ;;  %v621_v62 = vmul.f32 %v612_v38, %v579_v30  ;;  %v622_v8 = vmul.f32 %v616_v39, %v579_v30  ;;  %v772_v15 = vrot.slane %v1461_v20, %v1334_v4 }
 0x111   :  { %v551_v7 = vadd.f32 %v548_v57, %v473_v48  ;;  %v552_v11 = vadd.f32 %v549_v59, %v474_v49  ;;  %v553_v12 = vadd.f32 %v550_v60, %v475_v51  ;;  %v846_v42 = vrot.slane %v1488_v53, %v1331_v3 }
 0x112   :  { %v623_v14 = vadd.f32 %v620_v61, %v545_v52  ;;  %v624_v16 = vadd.f32 %v621_v62, %v546_v54  ;;  %v625_v17 = vadd.f32 %v622_v8, %v547_v55  ;;  %v603_v18 = vpop.xlane.xlu1 %602  ;;  %v850_v20 = vrot.slane %v1488_v53, %v1334_v4 }
 0x113   :  { %v626_v19 = vmul.f32 %v608_v37, %v603_v18  ;;  %v627_v21 = vmul.f32 %v612_v38, %v603_v18  ;;  %v628_v22 = vmul.f32 %v616_v39, %v603_v18  ;;  %v842_v38 = vrot.slane %v1488_v53, %v1328_v2 }
 0x114   :  { %v657_v28 = vpop.xlane.xlu0 %656  ;;  %v920_v51 = vrot.slane %v1493_v58, %v1328_v2  ;;  %v924_v57 = vrot.slane %v1493_v58, %v1331_v3  ;;  %v928_v53 = vrot.slane %v1493_v58, %v1334_v4 }
 0x115   :  { %v629_v24 = vadd.f32 %v626_v19, %v551_v7  ;;  %v630_v26 = vadd.f32 %v627_v21, %v552_v11  ;;  %v631_v27 = vadd.f32 %v628_v22, %v553_v12  ;;  %v698_v29 = vmul.f32 %v686_v63, %v657_v28 }
 0x116   :  { %v699_v31 = vmul.f32 %v690_v13, %v657_v28  ;;  %v700_v32 = vmul.f32 %v694_v45, %v657_v28  ;;  %v681_v33 = vpop.xlane.xlu1 %680 }
 0x117   :  { %v704_v50 = vmul.f32 %v686_v63, %v681_v33  ;;  %v705_v34 = vmul.f32 %v690_v13, %v681_v33  ;;  %v706_v35 = vmul.f32 %v694_v45, %v681_v33  ;;  %v701_v9 = vadd.f32 %v698_v29, %v623_v14 }
 0x118   :  { %v702_v36 = vadd.f32 %v699_v31, %v624_v16  ;;  %v703_v37 = vadd.f32 %v700_v32, %v625_v17  ;;  %v735_v25 = vpop.xlane.xlu0 %734 }
 0x119   :  { %v707_v39 = vadd.f32 %v704_v50, %v629_v24  ;;  %v708_v40 = vadd.f32 %v705_v34, %v630_v26  ;;  %v709_v41 = vadd.f32 %v706_v35, %v631_v27  ;;  %v776_v43 = vmul.f32 %v764_v23, %v735_v25 }
 0x11a   :  { %v777_v44 = vmul.f32 %v768_v6, %v735_v25  ;;  %v778_v46 = vmul.f32 %v772_v15, %v735_v25 }
 0x11b   :  { %v779_v47 = vadd.f32 %v776_v43, %v701_v9 }
 0x11c   :  { %v780_v10 = vadd.f32 %v777_v44, %v702_v36  ;;  %v781_v48 = vadd.f32 %v778_v46, %v703_v37  ;;  %v759_v49 = vpop.xlane.xlu1 %758  ;;  %v813_v56 = vpop.xlane.xlu0 %812 }
 0x11d   :  { %v782_v52 = vmul.f32 %v764_v23, %v759_v49  ;;  %v783_v54 = vmul.f32 %v768_v6, %v759_v49  ;;  %v784_v55 = vmul.f32 %v772_v15, %v759_v49  ;;  %v854_v59 = vmul.f32 %v842_v38, %v813_v56 }
 0x11e   :  { %v855_v60 = vmul.f32 %v846_v42, %v813_v56  ;;  %v856_v30 = vmul.f32 %v850_v20, %v813_v56 }
 0x11f   :  { %v785_v61 = vadd.f32 %v782_v52, %v707_v39  ;;  %v786_v62 = vadd.f32 %v783_v54, %v708_v40  ;;  %v787_v8 = vadd.f32 %v784_v55, %v709_v41  ;;  %v857_v63 = vadd.f32 %v854_v59, %v779_v47 }
 0x120   :  { %v858_v7 = vadd.f32 %v855_v60, %v780_v10  ;;  %v859_v11 = vadd.f32 %v856_v30, %v781_v48  ;;  %v837_v12 = vpop.xlane.xlu1 %836  ;;  %v1232_v10 = vmov 1966171168   ;;  %v965_v60 = vld [vmem:[#allocation8] sm:$0x7] }
 0x121   :  { %v860_v13 = vmul.f32 %v842_v38, %v837_v12  ;;  %v861_v14 = vmul.f32 %v846_v42, %v837_v12  ;;  %v862_v16 = vmul.f32 %v850_v20, %v837_v12  ;;  %v891_v17 = vpop.xlane.xlu0 %890  ;;  %v973_v48 = vunpack.c.l.s4 %v1232_v10 }
 0x122   :  { %v932_v18 = vmul.f32 %v920_v51, %v891_v17  ;;  %v933_v45 = vmul.f32 %v924_v57, %v891_v17  ;;  %v934_v19 = vmul.f32 %v928_v53, %v891_v17  ;;  %vm966_vm2 = vcmp.gt.f32.partialorder %v965_v60, 0.0 }
 0x123   :  { %v863_v21 = vadd.f32 %v860_v13, %v785_v61  ;;  %v864_v22 = vadd.f32 %v861_v14, %v786_v62  ;;  %v865_v23 = vadd.f32 %v862_v16, %v787_v8  ;;  %v974_v49 = vunpack.c.0.s8 %v973_v48 }
 0x124   :  { %v935_v24 = vadd.f32 %v932_v18, %v857_v63  ;;  %v936_v26 = vadd.f32 %v933_v45, %v858_v7  ;;  %v937_v58 = vadd.f32 %v934_v19, %v859_v11  ;;  %v915_v27 = vpop.xlane.xlu1 %914  ;;  %v997_v45 = vld [vmem:[#allocation7] sm:$0x7] }
 0x125   :  { %v938_v28 = vmul.f32 %v920_v51, %v915_v27  ;;  %v939_v6 = vmul.f32 %v924_v57, %v915_v27  ;;  %v940_v29 = vmul.f32 %v928_v53, %v915_v27  ;;  %v977_v52 = vsub.s32 %v974_v49, %v1325_v1  ;;  %v967_v53 = vld [vmem:[#allocation5] sm:$0x7] }
 0x126   :  { %v944_v31 = vmul.f32 0.03125, %v935_v24  ;;  %v945_v32 = vmul.f32 0.03125, %v936_v26  ;;  %v946_v33 = vmul.f32 0.03125, %v937_v58 }
 0x127   :  { %v941_v15 = vadd.f32 %v938_v28, %v863_v21  ;;  %v942_v50 = vadd.f32 %v939_v6, %v864_v22  ;;  %v943_v34 = vadd.f32 %v940_v29, %v865_v23 }
 0x128   :  { %v950_v35 = vmul.f32 %v944_v31, %v944_v31  ;;  %v951_v9 = vmul.f32 %v945_v32, %v945_v32  ;;  %v952_v36 = vmul.f32 %v946_v33, %v946_v33 }
 0x129   :  { %v947_v37 = vmul.f32 0.03125, %v941_v15  ;;  %v948_v38 = vmul.f32 0.03125, %v942_v50  ;;  %v949_v39 = vmul.f32 0.03125, %v943_v34 }
 0x12b   :  { %v953_v40 = vsub.f32 %v947_v37, %v950_v35  ;;  %v954_v41 = vsub.f32 %v948_v38, %v951_v9  ;;  %v955_v25 = vsub.f32 %v949_v39, %v952_v36 }
 0x12d   :  { %v956_v42 = vmax.f32 %v953_v40, 0.0  ;;  %v957_v43 = vmax.f32 %v954_v41, 0.0  ;;  %v958_v44 = vmax.f32 %v955_v25, 0.0 }
 0x12f   :  { %v959_v46 = vadd.f32 1e-05, %v956_v42  ;;  %v960_v20 = vadd.f32 1e-05, %v957_v43  ;;  %v961_v47 = vadd.f32 1e-05, %v958_v44 }
 0x131   :  { %1079 = vrsqrt.f32 %v959_v46 }
 0x132   :  { %1081 = vrsqrt.f32 %v960_v20 }
 0x133   :  { %1083 = vrsqrt.f32 %v961_v47 }
 0x13b   :  { %v1080_v51 = vpop.eup %1079 }
 0x13c   :  { %v1082_v54 = vpop.eup %1081 }
 0x13d   :  { %v1084_v55 = vpop.eup %1083  ;;  %v971_v56 = vcombine.low %v1080_v51, %v1082_v54 }
 0x13e   :  { %v985_v59 = vrot.slane %v1084_v55, %v977_v52 }
 0x13f   :  { %v978_v57 = vrot.slane %v971_v56, %v977_v52 }
 0x141   :  { %v986_v30 = vcombine.low %v978_v57, %v985_v59 }
 0x143   :  { %v993_v61 = vrot.slane %v986_v30, %v977_v52 }
 0x145   :  { %v995_v62 = vmul.f32 %v993_v61, %v967_v53 }
 0x147   :  { %v996_v8 = vsel %vm966_vm2, %v995_v62, 1.0 }
 0x148   :  { %v1002_v63 = vrot.slane %v996_v8, %v1328_v2  ;;  %v1006_v7 = vrot.slane %v996_v8, %v1331_v3  ;;  %v1010_v11 = vrot.slane %v996_v8, %v1334_v4  ;;  %v1046_v22 = vmul.f32 %v996_v8, %v1336_v5 }
 0x14a   :  { %v1014_v1 = vmul.f32 %v1002_v63, %v944_v31  ;;  %v1015_v12 = vmul.f32 %v1006_v7, %v945_v32  ;;  %v1016_v13 = vmul.f32 %v1010_v11, %v946_v33 }
 0x14c   :  { %v1020_v14 = vcombine.low %v1014_v1, %v1015_v12  ;;  %v1034_v17 = vrot.slane %v1016_v13, %v977_v52 }
 0x14e   :  { %v1027_v16 = vrot.slane %v1020_v14, %v977_v52 }
 0x150   :  { %v1035_v18 = vcombine.low %v1027_v16, %v1034_v17 }
 0x152   :  { %v1042_v19 = vrot.slane %v1035_v18, %v977_v52 }
 0x154   :  { %v1044_v21 = vsub.f32 %v997_v45, %v1042_v19 }
 0x156   :  { %v1045_v2 = vsel %vm966_vm2, %v1044_v21, 0.0 }
 0x157   :  { %v1047_v3 = vadd.f32 %v1046_v22, %v1045_v2 }
 0x159   :  { %1052 = vst.msk [vmem:[#allocation11] sm:$0x7] %vm1050_vm3, %v1047_v3 }
 0x15a   :  { %1206 = shalt.err (!%p1203_p2)
}
 0x15b   :  { %s1207_s8 = scalar_lea.hbm %s1631_s5, 48 }
 0x15c   :  { %p1208_p3 = scmp.ne.s32.totalorder %s1631_s5, %s1207_s8  ;;  %p1211_p4 = scmp.lt.u32.totalorder %s1207_s8, %s1631_s5 }
 0x15e   :  { %p1213_p5 = pnand %p1211_p4, %p1208_p3 }
 0x160   :  { %1216 = shalt.err (!%p1213_p5)
}
 0x161   :  { %1062 = dma.vmem_to_hbm [thread:$0]  %s1060_s3, 48, %s1631_s5, [#allocation4]  }
 0x162   :  { %1223 = dma.done.wait [#allocation4], 48  }
 0x163   :  { %1224 = vsyncadd [#allocation4], 4294967248 }
 0x164   :  { %1066 = vsyncpa [#allocation3], 1 }
 0x165   :  { %1067 = vsyncpa [#allocation6], 1 }
 0x166   :  { %1068 = vsyncpa [#allocation9], 1 }
 0x167   :  { %1069 = vsyncpa [#allocation4], 1 }

</bundles_post_ra>
